<compile_context>
chip_gen: v7x
topology: tpu7x:2x2x1
jax: 0.10.0
libtpu: 0.0.40
codegen_flags: <defaults>
</compile_context>

<pallas_src>
import functools

import numpy as np
import jax
import jax.numpy as jnp
from jax import lax
from jax.experimental import pallas as pl
from jax.experimental.pallas import tpu as pltpu

KERNEL = 3          # Conv2d kernel size
CONV_OUT = 32       # CNNLayer hidden_size // 2
CNN_HIDDEN = 64     # CNNLayer output dim (== mlp input 64)
MLP_HIDDEN = 256
PACK_W = 128        # lane-dense packed output width: mu in lanes [0,A), logp in lane A
LOG2PI = float(np.log(2.0 * np.pi))


# ----------------------------- Pallas kernels ------------------------------ #

def _conv_gemm_kernel(p_ref, w_ref, b_ref, o_ref):
    # Conv2d(k=3, s=1, pad=0) as im2col GEMM (bf16 x bf16 -> f32 acc) + bias + ReLU.
    # Output stored bf16 so the fc1 operand is MXU-narrow and the inter-kernel
    # HBM round trip is halved.
    y = jnp.dot(p_ref[...], w_ref[...], preferred_element_type=jnp.float32)
    o_ref[...] = jnp.maximum(y + b_ref[...], 0.0).astype(o_ref.dtype)


def _mlp_head_kernel(x_ref, w1_ref, b1_ref, w2_ref, b2_ref, w3_ref, b3_ref,
                     w4_ref, b4_ref, inv_std_ref, lpc_ref, act_ref, out_ref,
                     *, a_dim):
    # All matmuls are bf16 x bf16 with f32 accumulation; elementwise math is f32.
    # CNNLayer fc1 + ReLU
    h = jnp.dot(x_ref[...], w1_ref[...], preferred_element_type=jnp.float32) + b1_ref[...]
    h = jnp.maximum(h, 0.0)
    # CNNLayer fc2 + ReLU
    h = jnp.dot(h.astype(jnp.bfloat16), w2_ref[...],
                preferred_element_type=jnp.float32) + b2_ref[...]
    h = jnp.maximum(h, 0.0)
    # linear_layer hidden: Linear(64, 256) + Tanh (mlp `activation`)
    h = jnp.tanh(jnp.dot(h.astype(jnp.bfloat16), w3_ref[...],
                         preferred_element_type=jnp.float32) + b3_ref[...])
    # linear_layer output: Linear(256, act_dim) + Tanh (output_activation).
    # w4/b4 are zero-padded to PACK_W columns, so mu is already a lane-dense
    # (N, 128) slab with tanh(0) = 0 in lanes >= a_dim.
    mu = jnp.tanh(jnp.dot(h.astype(jnp.bfloat16), w4_ref[...],
                          preferred_element_type=jnp.float32) + b4_ref[...])

    # Normal(mu, exp(log_std)).log_prob(act).sum(-1); exp(-log_std) and the
    # additive constant are precomputed and zero-padded past lane a_dim, so the
    # padded lanes contribute exactly 0 to the sum.
    z = (act_ref[...] - mu) * inv_std_ref[...]
    logp = jnp.sum(lpc_ref[...] - 0.5 * z * z, axis=-1, keepdims=True)

    # Single unmasked lane-dense store: mu in lanes [0, a_dim), logp in lane a_dim.
    lane = lax.broadcasted_iota(jnp.int32, out_ref.shape, 1)
    out_ref[...] = jnp.where(lane == a_dim, logp, mu)


# ------------------------------- glue (JAX) -------------------------------- #

def _im2col(x, k=KERNEL):
    """NCHW -> (N*Ho*Wo, C*k*k) patches; rows ordered (n, ho, wo)."""
    N, C, H, W = x.shape
    Ho, Wo = H - k + 1, W - k + 1
    cols = [x[:, :, i:i + Ho, j:j + Wo] for i in range(k) for j in range(k)]
    p = jnp.stack(cols, axis=2)                     # (N, C, k*k, Ho, Wo)
    p = jnp.transpose(p, (0, 3, 4, 1, 2))           # (N, Ho, Wo, C, k*k)
    return p.reshape(N * Ho * Wo, C * k * k), (N, Ho, Wo)


def init_params(key, input_shape, act_dim):
    """Deterministic synthetic parameters (PyTorch-Linear-style uniform init)."""
    C, H, W = input_shape
    Ho, Wo = H - KERNEL + 1, W - KERNEL + 1
    feat_dim = CONV_OUT * Ho * Wo

    def lin(k, fan_in, fan_out):
        lim = 1.0 / np.sqrt(fan_in)
        kw, kb = jax.random.split(k)
        w = jax.random.uniform(kw, (fan_in, fan_out), jnp.float32, -lim, lim)
        b = jax.random.uniform(kb, (1, fan_out), jnp.float32, -lim, lim)
        return w, b

    ks = jax.random.split(key, 5)
    conv_w, conv_b = lin(ks[0], C * KERNEL * KERNEL, CONV_OUT)
    w1, b1 = lin(ks[1], feat_dim, CNN_HIDDEN)
    w2, b2 = lin(ks[2], CNN_HIDDEN, CNN_HIDDEN)
    w3, b3 = lin(ks[3], CNN_HIDDEN, MLP_HIDDEN)
    w4, b4 = lin(ks[4], MLP_HIDDEN, act_dim)
    log_std = jnp.full((1, act_dim), -0.5, jnp.float32)   # -0.5 * np.ones(act_dim)
    return dict(conv_w=conv_w, conv_b=conv_b, w1=w1, b1=b1, w2=w2, b2=b2,
                w3=w3, b3=b3, w4=w4, b4=b4, log_std=log_std)


def prepare_params(params, input_shape, act_dim):
    """One-time parameter prep:
       * fold /255 into conv_w and cast it (and w1/w2/w3/w4) to bf16 for the MXU,
       * fold the channel-major Flatten permutation into w1,
       * zero-pad w4/b4/inv_std/lp_const to PACK_W lanes so the head kernel is
         fully lane-dense,
       * precompute inv_std, the log-prob constant and std."""
    C, H, W = input_shape
    Ho, Wo = H - KERNEL + 1, W - KERNEL + 1
    assert act_dim + 1 <= PACK_W, "packed (mu, logp) output assumes act_dim + 1 <= 128"
    pad = PACK_W - act_dim

    conv_w = (params["conv_w"] / 255.0).astype(jnp.bfloat16)    # x/255 folded into weight
    # w1 rows are (cout, ho, wo)-major (PyTorch flatten); reorder to
    # (ho, wo, cout)-major so the conv GEMM's natural row-major output feeds fc1
    # with a free reshape (no transpose/relayout).
    w1p = (params["w1"]
           .reshape(CONV_OUT, Ho * Wo, CNN_HIDDEN)
           .transpose(1, 0, 2)
           .reshape(Ho * Wo * CONV_OUT, CNN_HIDDEN)
           .astype(jnp.bfloat16))
    log_std = params["log_std"]
    return dict(
        conv_w=conv_w, conv_b=params["conv_b"],
        w1=w1p, b1=params["b1"],
        w2=params["w2"].astype(jnp.bfloat16), b2=params["b2"],
        w3=params["w3"].astype(jnp.bfloat16), b3=params["b3"],
        w4=jnp.pad(params["w4"], ((0, 0), (0, pad))).astype(jnp.bfloat16),
        b4=jnp.pad(params["b4"], ((0, 0), (0, pad))),
        inv_std=jnp.pad(jnp.exp(-log_std), ((0, 0), (0, pad))),
        lp_const=jnp.pad(-log_std - 0.5 * LOG2PI, ((0, 0), (0, pad))),
        std=jnp.exp(log_std)[0])


def cnn_gaussian_actor_forward(prep, obs, act):
    """Returns (mu, std, logp_a) — the Normal(mu, std) parameters + log_prob sum."""
    # Patches emitted directly in bf16 (/255 already folded into conv_w).
    patches, (N, Ho, Wo) = _im2col(obs.astype(jnp.bfloat16))
    P = patches.shape[0]
    A = act.shape[-1]

    vmem = pl.BlockSpec(memory_space=pltpu.MemorySpace.VMEM)

    # Kernel 1: conv-as-GEMM + bias + ReLU (whole-array VMEM blocks; shapes small).
    conv_out = pl.pallas_call(
        _conv_gemm_kernel,
        out_shape=jax.ShapeDtypeStruct((P, CONV_OUT), jnp.bfloat16),
        in_specs=[vmem, vmem, vmem],
        out_specs=vmem,
    )(patches, prep["conv_w"], prep["conv_b"])

    # Row-major (P, 32) -> (N, Ho*Wo*32): a free bitcast reshape in XLA.  The
    # PyTorch channel-major flatten permutation lives inside w1 (prepare_params).
    feat = conv_out.reshape(N, Ho * Wo * CONV_OUT)

    # act padded to the packed lane width so the head kernel is fully lane-dense.
    act_pad = jnp.pad(act.astype(jnp.float32), ((0, 0), (0, PACK_W - A)))

    # Kernel 2: fc1 -> fc2 -> Linear(64,256)+Tanh -> Linear(256,A)+Tanh -> logp,
    # packed into one lane-dense (N, 128) output (single unmasked store).
    packed = pl.pallas_call(
        functools.partial(_mlp_head_kernel, a_dim=A),
        out_shape=jax.ShapeDtypeStruct((N, PACK_W), jnp.float32),
        in_specs=[vmem] * 12,
        out_specs=vmem,
    )(feat, prep["w1"], prep["b1"], prep["w2"], prep["b2"], prep["w3"], prep["b3"],
      prep["w4"], prep["b4"], prep["inv_std"], prep["lp_const"], act_pad)

    mu = packed[:, :A]
    logp = packed[:, A]
    return mu, prep["std"], logp


def _reference(params, obs, act):
    """Plain-JAX reference of the PyTorch forward math (channel-major flatten)."""
    x = obs.astype(jnp.float32) / 255.0
    patches, (N, Ho, Wo) = _im2col(x)
    y = jnp.maximum(patches @ params["conv_w"] + params["conv_b"], 0.0)
    feat = y.reshape(N, Ho, Wo, CONV_OUT).transpose(0, 3, 1, 2).reshape(N, -1)
    h = jnp.maximum(feat @ params["w1"] + params["b1"], 0.0)
    h = jnp.maximum(h @ params["w2"] + params["b2"], 0.0)
    h = jnp.tanh(h @ params["w3"] + params["b3"])
    mu = jnp.tanh(h @ params["w4"] + params["b4"])
    log_std = params["log_std"]
    z = (act - mu) / jnp.exp(log_std)
    logp = jnp.sum(-0.5 * z * z - log_std - 0.5 * LOG2PI, axis=-1)
    return mu, logp


if __name__ == "__main__":
    key = jax.random.PRNGKey(0)
    input_shape = (4, 16, 16)     # (C, H, W)
    act_dim = 3
    batch = 2

    kp, ko, ka = jax.random.split(key, 3)
    params = init_params(kp, input_shape, act_dim)
    prep = prepare_params(params, input_shape, act_dim)
    obs = jax.random.uniform(ko, (batch,) + input_shape, jnp.float32, 0.0, 255.0)
    act = jax.random.normal(ka, (batch, act_dim), jnp.float32)

    fwd = jax.jit(cnn_gaussian_actor_forward)
    mu, std, logp = fwd(prep, obs, act)
    jax.block_until_ready((mu, std, logp))

    mu_r, logp_r = _reference(params, obs, act)
    assert mu.shape == (batch, act_dim) and std.shape == (act_dim,) and logp.shape == (batch,)
    assert np.allclose(np.asarray(mu), np.asarray(mu_r), atol=2e-2, rtol=2e-2)
    assert np.allclose(np.asarray(std), np.asarray(np.exp(params["log_std"])[0]),
                       atol=1e-6, rtol=1e-6)
    assert np.allclose(np.asarray(logp), np.asarray(logp_r), atol=2e-2, rtol=2e-2)

    print("KERNEL_OK")
</pallas_src>

<mosaic_0001>
module attributes {stable_mosaic.version = 11 : i64} {
  func.func @_conv_gemm_kernel(%arg0: memref<392x36xbf16, #tpu.memory_space<vmem>>, %arg1: memref<36x32xbf16, #tpu.memory_space<vmem>>, %arg2: memref<1x32xf32, #tpu.memory_space<vmem>>, %arg3: memref<392x32xbf16, #tpu.memory_space<vmem>>) attributes {dimension_semantics = [], scalar_prefetch = 0 : i64, scratch_operands = 0 : i64, tpu.core_type = #tpu.core_type<tc>} {
    %c0 = arith.constant 0 : index
    %c0_0 = arith.constant 0 : index
    %0 = vector.load %arg0[%c0, %c0_0] : memref<392x36xbf16, #tpu.memory_space<vmem>>, vector<392x36xbf16>
    %c0_1 = arith.constant 0 : index
    %c0_2 = arith.constant 0 : index
    %1 = vector.load %arg1[%c0_1, %c0_2] : memref<36x32xbf16, #tpu.memory_space<vmem>>, vector<36x32xbf16>
    %cst = arith.constant dense<0.000000e+00> : vector<392x32xf32>
    %2 = tpu.matmul %0, %1, %cst {dimension_numbers = #tpu.dot_dimension_numbers<[1], [0], [0], [1], [0, 0, 1, 1], [], []>} : vector<392x36xbf16>, vector<36x32xbf16>, vector<392x32xf32> -> vector<392x32xf32>
    %c0_3 = arith.constant 0 : index
    %c0_4 = arith.constant 0 : index
    %3 = vector.load %arg2[%c0_3, %c0_4] : memref<1x32xf32, #tpu.memory_space<vmem>>, vector<1x32xf32>
    %4 = vector.broadcast %3 : vector<1x32xf32> to vector<392x32xf32>
    %5 = arith.addf %2, %4 : vector<392x32xf32>
    %cst_5 = arith.constant 0.000000e+00 : f32
    %6 = vector.broadcast %cst_5 : f32 to vector<392x32xf32>
    %7 = arith.maximumf %5, %6 : vector<392x32xf32>
    %8 = arith.truncf %7 : vector<392x32xf32> to vector<392x32xbf16>
    %c0_6 = arith.constant 0 : index
    %c0_7 = arith.constant 0 : index
    %9 = vector.load %arg3[%c0_6, %c0_7] : memref<392x32xbf16, #tpu.memory_space<vmem>>, vector<392x32xbf16>
    tpu.vector_store %arg3[%c0_6, %c0_7], %8 {strides = array<i32>} : memref<392x32xbf16, #tpu.memory_space<vmem>>, vector<392x32xbf16>,
    return
  }
}

module attributes {stable_mosaic.version = 11 : i64} {
  func.func @_mlp_head_kernel(%arg0: memref<2x6272xbf16, #tpu.memory_space<vmem>>, %arg1: memref<6272x64xbf16, #tpu.memory_space<vmem>>, %arg2: memref<1x64xf32, #tpu.memory_space<vmem>>, %arg3: memref<64x64xbf16, #tpu.memory_space<vmem>>, %arg4: memref<1x64xf32, #tpu.memory_space<vmem>>, %arg5: memref<64x256xbf16, #tpu.memory_space<vmem>>, %arg6: memref<1x256xf32, #tpu.memory_space<vmem>>, %arg7: memref<256x128xbf16, #tpu.memory_space<vmem>>, %arg8: memref<1x128xf32, #tpu.memory_space<vmem>>, %arg9: memref<1x128xf32, #tpu.memory_space<vmem>>, %arg10: memref<1x128xf32, #tpu.memory_space<vmem>>, %arg11: memref<2x128xf32, #tpu.memory_space<vmem>>, %arg12: memref<2x128xf32, #tpu.memory_space<vmem>>) attributes {dimension_semantics = [], scalar_prefetch = 0 : i64, scratch_operands = 0 : i64, tpu.core_type = #tpu.core_type<tc>} {
    %c0 = arith.constant 0 : index
    %c0_0 = arith.constant 0 : index
    %0 = vector.load %arg0[%c0, %c0_0] : memref<2x6272xbf16, #tpu.memory_space<vmem>>, vector<2x6272xbf16>
    %c0_1 = arith.constant 0 : index
    %c0_2 = arith.constant 0 : index
    %1 = vector.load %arg1[%c0_1, %c0_2] : memref<6272x64xbf16, #tpu.memory_space<vmem>>, vector<6272x64xbf16>
    %cst = arith.constant dense<0.000000e+00> : vector<2x64xf32>
    %2 = tpu.matmul %0, %1, %cst {dimension_numbers = #tpu.dot_dimension_numbers<[1], [0], [0], [1], [0, 0, 1, 1], [], []>} : vector<2x6272xbf16>, vector<6272x64xbf16>, vector<2x64xf32> -> vector<2x64xf32>
    %c0_3 = arith.constant 0 : index
    %c0_4 = arith.constant 0 : index
    %3 = vector.load %arg2[%c0_3, %c0_4] : memref<1x64xf32, #tpu.memory_space<vmem>>, vector<1x64xf32>
    %4 = vector.broadcast %3 : vector<1x64xf32> to vector<2x64xf32>
    %5 = arith.addf %2, %4 : vector<2x64xf32>
    %cst_5 = arith.constant 0.000000e+00 : f32
    %6 = vector.broadcast %cst_5 : f32 to vector<2x64xf32>
    %7 = arith.maximumf %5, %6 : vector<2x64xf32>
    %8 = arith.truncf %7 : vector<2x64xf32> to vector<2x64xbf16>
    %c0_6 = arith.constant 0 : index
    %c0_7 = arith.constant 0 : index
    %9 = vector.load %arg3[%c0_6, %c0_7] : memref<64x64xbf16, #tpu.memory_space<vmem>>, vector<64x64xbf16>
    %cst_8 = arith.constant dense<0.000000e+00> : vector<2x64xf32>
    %10 = tpu.matmul %8, %9, %cst_8 {dimension_numbers = #tpu.dot_dimension_numbers<[1], [0], [0], [1], [0, 0, 1, 1], [], []>} : vector<2x64xbf16>, vector<64x64xbf16>, vector<2x64xf32> -> vector<2x64xf32>
    %c0_9 = arith.constant 0 : index
    %c0_10 = arith.constant 0 : index
    %11 = vector.load %arg4[%c0_9, %c0_10] : memref<1x64xf32, #tpu.memory_space<vmem>>, vector<1x64xf32>
    %12 = vector.broadcast %11 : vector<1x64xf32> to vector<2x64xf32>
    %13 = arith.addf %10, %12 : vector<2x64xf32>
    %cst_11 = arith.constant 0.000000e+00 : f32
    %14 = vector.broadcast %cst_11 : f32 to vector<2x64xf32>
    %15 = arith.maximumf %13, %14 : vector<2x64xf32>
    %16 = arith.truncf %15 : vector<2x64xf32> to vector<2x64xbf16>
    %c0_12 = arith.constant 0 : index
    %c0_13 = arith.constant 0 : index
    %17 = vector.load %arg5[%c0_12, %c0_13] : memref<64x256xbf16, #tpu.memory_space<vmem>>, vector<64x256xbf16>
    %cst_14 = arith.constant dense<0.000000e+00> : vector<2x256xf32>
    %18 = tpu.matmul %16, %17, %cst_14 {dimension_numbers = #tpu.dot_dimension_numbers<[1], [0], [0], [1], [0, 0, 1, 1], [], []>} : vector<2x64xbf16>, vector<64x256xbf16>, vector<2x256xf32> -> vector<2x256xf32>
    %c0_15 = arith.constant 0 : index
    %c0_16 = arith.constant 0 : index
    %19 = vector.load %arg6[%c0_15, %c0_16] : memref<1x256xf32, #tpu.memory_space<vmem>>, vector<1x256xf32>
    %20 = vector.broadcast %19 : vector<1x256xf32> to vector<2x256xf32>
    %21 = arith.addf %18, %20 : vector<2x256xf32>
    %22 = math.tanh %21 : vector<2x256xf32>
    %23 = arith.truncf %22 : vector<2x256xf32> to vector<2x256xbf16>
    %c0_17 = arith.constant 0 : index
    %c0_18 = arith.constant 0 : index
    %24 = vector.load %arg7[%c0_17, %c0_18] : memref<256x128xbf16, #tpu.memory_space<vmem>>, vector<256x128xbf16>
    %cst_19 = arith.constant dense<0.000000e+00> : vector<2x128xf32>
    %25 = tpu.matmul %23, %24, %cst_19 {dimension_numbers = #tpu.dot_dimension_numbers<[1], [0], [0], [1], [0, 0, 1, 1], [], []>} : vector<2x256xbf16>, vector<256x128xbf16>, vector<2x128xf32> -> vector<2x128xf32>
    %c0_20 = arith.constant 0 : index
    %c0_21 = arith.constant 0 : index
    %26 = vector.load %arg8[%c0_20, %c0_21] : memref<1x128xf32, #tpu.memory_space<vmem>>, vector<1x128xf32>
    %27 = vector.broadcast %26 : vector<1x128xf32> to vector<2x128xf32>
    %28 = arith.addf %25, %27 : vector<2x128xf32>
    %29 = math.tanh %28 : vector<2x128xf32>
    %c0_22 = arith.constant 0 : index
    %c0_23 = arith.constant 0 : index
    %30 = vector.load %arg11[%c0_22, %c0_23] : memref<2x128xf32, #tpu.memory_space<vmem>>, vector<2x128xf32>
    %31 = arith.subf %30, %29 : vector<2x128xf32>
    %c0_24 = arith.constant 0 : index
    %c0_25 = arith.constant 0 : index
    %32 = vector.load %arg9[%c0_24, %c0_25] : memref<1x128xf32, #tpu.memory_space<vmem>>, vector<1x128xf32>
    %33 = vector.broadcast %32 : vector<1x128xf32> to vector<2x128xf32>
    %34 = arith.mulf %31, %33 : vector<2x128xf32>
    %c0_26 = arith.constant 0 : index
    %c0_27 = arith.constant 0 : index
    %35 = vector.load %arg10[%c0_26, %c0_27] : memref<1x128xf32, #tpu.memory_space<vmem>>, vector<1x128xf32>
    %cst_28 = arith.constant 5.000000e-01 : f32
    %36 = vector.broadcast %cst_28 : f32 to vector<2x128xf32>
    %37 = arith.mulf %36, %34 : vector<2x128xf32>
    %38 = arith.mulf %37, %34 : vector<2x128xf32>
    %39 = vector.broadcast %35 : vector<1x128xf32> to vector<2x128xf32>
    %40 = arith.subf %39, %38 : vector<2x128xf32>
    %cst_29 = arith.constant dense<0.000000e+00> : vector<2xf32>
    %41 = vector.multi_reduction <add>, %40, %cst_29 [1] : vector<2x128xf32> to vector<2xf32>
    %42 = vector.shape_cast %41 : vector<2xf32> to vector<2x1xf32>
    %43 = tpu.iota {dimensions = array<i32: 1>} : vector<2x128xi32>
    %c3_i32 = arith.constant 3 : i32
    %44 = vector.broadcast %c3_i32 : i32 to vector<2x128xi32>
    %45 = arith.cmpi eq, %43, %44 : vector<2x128xi32>
    %46 = vector.shape_cast %42 : vector<2x1xf32> to vector<2x1xf32>
    %47 = vector.broadcast %46 : vector<2x1xf32> to vector<2x128xf32>
    %48 = arith.select %45, %47, %29 : vector<2x128xi1>, vector<2x128xf32>
    %c0_30 = arith.constant 0 : index
    %c0_31 = arith.constant 0 : index
    %49 = vector.load %arg12[%c0_30, %c0_31] : memref<2x128xf32, #tpu.memory_space<vmem>>, vector<2x128xf32>
    tpu.vector_store %arg12[%c0_30, %c0_31], %48 {strides = array<i32>} : memref<2x128xf32, #tpu.memory_space<vmem>>, vector<2x128xf32>,
    return
  }
}

</mosaic_0001>

<bundles_post_ra>
// kernel: cnn_gaussian_actor_forward.2
= control target key start
LH: loop header
LB: loop body
LE: loop exit
PB: predicated region body
PF: predicated region fallthrough
CT: control target
= control target key end

     0   :  { %v1148_v0 = vmov 0.0   ;;  %vm1149_vm0 = vmmov 0   ;;  %vm290_vm1 = vcmask 1041408   ;;  %vm214_vm2 = vcmask 293888   ;;  %s1585_s1 = inlined_call_operand.vmem [shape: bf16[36,32], index: 1, kind: input, shape index: {}]   ;;  %s1586_s0 = inlined_call_operand.vmem [shape: bf16[392,36], index: 0, kind: input, shape index: {}]   ;;  %s1587_s2 = inlined_call_operand.vmem [shape: f32[1,32], index: 2, kind: input, shape index: {}]   ;;  %s1588_s3 = inlined_call_operand.vmem [shape: bf16[392,32], index: 3, kind: output, shape index: {}]  }
   0x1   :  { %1006 = vmatprep.subr.bf16.mxu0 %v1148_v0  ;;  %v1120_v1 = vld [vmem:[%s1585_s1] sm:$0xff]   ;;  %1112 = vmatprep.subr.bf16.mxu1 %v1148_v0  ;;  %v1121_v2 = vld [vmem:[%s1585_s1 + $0x8] sm:$0xff]   ;;  %v1122_v3 = vld [vmem:[%s1585_s1 + $0x10] ss:$0 sps:$4 sm:$0x33]   ;;  %vm772_vm3 = vcmask 257024  }
   0x2   :  { %1012 = vmatprep.mubr.msk.bf16.mxu0 %vm1149_vm0, %v1148_v0  ;;  %1064 = vmatprep.mubr.msk.bf16.mxu1 %vm1149_vm0, %v1148_v0  ;;  %v292_v4 = vsel %vm290_vm1, %v1122_v3, 0  ;;  %v1123_v5 = vld [vmem:[%s1586_s0] sm:$0xff]   ;;  %v1124_v6 = vld [vmem:[%s1586_s0 + $0x68] sm:$0xff]   ;;  %v1126_v8 = vld [vmem:[%s1586_s0 + $0x70] sm:$0xff]  }
   0x3   :  { %1007 = vmatpush3.bf16.msra.mxu0 %v1120_v1  ;;  %1115 = vmatpush3.bf16.msra.mxu1 %v1120_v1  ;;  %v1125_v7 = vld [vmem:[%s1586_s0 + $0x8] sm:$0xff]   ;;  %v1127_v9 = vld [vmem:[%s1586_s0 + $0x10] sm:$0xff]   ;;  %v1128_v10 = vld [vmem:[%s1586_s0 + $0x78] sm:$0xff]  }
   0x4   :  { %1008 = vmatprep.subr.bf16.mxu0 %v1148_v0  ;;  %1113 = vmatprep.subr.bf16.mxu1 %v1148_v0  ;;  %v1129_v11 = vld [vmem:[%s1586_s0 + $0x18] sm:$0xff]   ;;  %v1130_v12 = vld [vmem:[%s1586_s0 + $0x80] sm:$0xff]   ;;  %v1132_v14 = vld [vmem:[%s1586_s0 + $0x88] sm:$0xff]  }
   0x5   :  { %v1131_v13 = vld [vmem:[%s1586_s0 + $0x20] sm:$0xff]   ;;  %v1133_v15 = vld [vmem:[%s1586_s0 + $0x28] sm:$0xff]   ;;  %v1134_v16 = vld [vmem:[%s1586_s0 + $0x90] sm:$0xff]  }
   0x6   :  { %v1135_v17 = vld [vmem:[%s1586_s0 + $0x30] sm:$0xff]   ;;  %v1136_v18 = vld [vmem:[%s1586_s0 + $0x98] sm:$0xff]   ;;  %v1138_v20 = vld [vmem:[%s1586_s0 + $0xa0] sm:$0xff]  }
   0x7   :  { %1009 = vmatpush3.bf16.msra.mxu0 %v1121_v2  ;;  %1116 = vmatpush3.bf16.msra.mxu1 %v1121_v2  ;;  %v1137_v19 = vld [vmem:[%s1586_s0 + $0x38] sm:$0xff]   ;;  %v1139_v21 = vld [vmem:[%s1586_s0 + $0x40] sm:$0xff]   ;;  %v1140_v22 = vld [vmem:[%s1586_s0 + $0xa8] sm:$0xff]  }
   0x8   :  { %1010 = vmatprep.subr.bf16.mxu0 %v1148_v0  ;;  %1114 = vmatprep.subr.bf16.mxu1 %v1148_v0  ;;  %v1141_v23 = vld [vmem:[%s1586_s0 + $0x48] sm:$0xff]   ;;  %v1142_v24 = vld [vmem:[%s1586_s0 + $0xb0] sm:$0xff]   ;;  %v1144_v26 = vld [vmem:[%s1586_s0 + $0xb8] sm:$0xff]  }
   0x9   :  { %v1143_v25 = vld [vmem:[%s1586_s0 + $0x50] sm:$0xff]   ;;  %v1145_v27 = vld [vmem:[%s1586_s0 + $0x58] sm:$0xff]   ;;  %v1146_v28 = vld [vmem:[%s1586_s0 + $0xc0] ss:$0 sps:$4 sm:$0xff]  }
   0xa   :  { %v1147_v29 = vld [vmem:[%s1586_s0 + $0x60] sm:$0xff]  }
   0xb   :  { %1011 = vmatpush3.bf16.msra.mxu0 %v292_v4  ;;  %1117 = vmatpush3.bf16.msra.mxu1 %v292_v4  ;;  %v1338_v30 = vld [vmem:[%s1587_s2] ss:$0 sm:$0xff] }
   0xe   :  { %1013 = vmatmul.mubr.msk.bf16.vlgmr.msra.gmra.mrb[0].mxu0 %vm214_vm2, %v1123_v5  ;;  %1065 = vmatmul.mubr.msk.bf16.vlgmr.msra.gmra.mrb[0].mxu1 %vm214_vm2, %v1124_v6 }
   0xf   :  { %1016 = vmatprep.mubr.msk.bf16.mxu0 %vm1149_vm0, %v1148_v0  ;;  %1068 = vmatprep.mubr.msk.bf16.mxu1 %vm1149_vm0, %v1148_v0 }
  0x16   :  { %1017 = vmatmul.mubr.msk.bf16.gmra.mrb[4].mxu0 %vm214_vm2, %v1125_v7  ;;  %1069 = vmatmul.mubr.msk.bf16.gmra.mrb[4].mxu1 %vm214_vm2, %v1126_v8 }
  0x17   :  { %1020 = vmatprep.mubr.msk.bf16.mxu0 %vm1149_vm0, %v1148_v0  ;;  %1072 = vmatprep.mubr.msk.bf16.mxu1 %vm1149_vm0, %v1148_v0 }
  0x1e   :  { %1021 = vmatmul.mubr.msk.bf16.gmra.mrb[8].mxu0 %vm214_vm2, %v1127_v9  ;;  %1073 = vmatmul.mubr.msk.bf16.gmra.mrb[8].mxu1 %vm214_vm2, %v1128_v10 }
  0x1f   :  { %1024 = vmatprep.mubr.msk.bf16.mxu0 %vm1149_vm0, %v1148_v0  ;;  %1076 = vmatprep.mubr.msk.bf16.mxu1 %vm1149_vm0, %v1148_v0 }
  0x26   :  { %1025 = vmatmul.mubr.msk.bf16.gmra.mrb[12].mxu0 %vm214_vm2, %v1129_v11  ;;  %1077 = vmatmul.mubr.msk.bf16.gmra.mrb[12].mxu1 %vm214_vm2, %v1130_v12 }
  0x27   :  { %1028 = vmatprep.mubr.msk.bf16.mxu0 %vm1149_vm0, %v1148_v0  ;;  %1080 = vmatprep.mubr.msk.bf16.mxu1 %vm1149_vm0, %v1148_v0 }
  0x2e   :  { %1029 = vmatmul.mubr.msk.bf16.gmra.mrb[16].mxu0 %vm214_vm2, %v1131_v13  ;;  %1081 = vmatmul.mubr.msk.bf16.gmra.mrb[16].mxu1 %vm214_vm2, %v1132_v14 }
  0x2f   :  { %1032 = vmatprep.mubr.msk.bf16.mxu0 %vm1149_vm0, %v1148_v0  ;;  %1084 = vmatprep.mubr.msk.bf16.mxu1 %vm1149_vm0, %v1148_v0 }
  0x36   :  { %1033 = vmatmul.mubr.msk.bf16.gmra.mrb[20].mxu0 %vm214_vm2, %v1133_v15  ;;  %1085 = vmatmul.mubr.msk.bf16.gmra.mrb[20].mxu1 %vm214_vm2, %v1134_v16 }
  0x37   :  { %1036 = vmatprep.mubr.msk.bf16.mxu0 %vm1149_vm0, %v1148_v0  ;;  %1088 = vmatprep.mubr.msk.bf16.mxu1 %vm1149_vm0, %v1148_v0 }
  0x3e   :  { %1037 = vmatmul.mubr.msk.bf16.gmra.mrb[24].mxu0 %vm214_vm2, %v1135_v17  ;;  %1089 = vmatmul.mubr.msk.bf16.gmra.mrb[24].mxu1 %vm214_vm2, %v1136_v18 }
  0x3f   :  { %1040 = vmatprep.mubr.msk.bf16.mxu0 %vm1149_vm0, %v1148_v0  ;;  %1092 = vmatprep.mubr.msk.bf16.mxu1 %vm1149_vm0, %v1148_v0 }
  0x46   :  { %1041 = vmatmul.mubr.msk.bf16.gmra.mrb[28].mxu0 %vm214_vm2, %v1137_v19  ;;  %1093 = vmatmul.mubr.msk.bf16.gmra.mrb[28].mxu1 %vm214_vm2, %v1138_v20 }
  0x47   :  { %1044 = vmatprep.mubr.msk.bf16.mxu0 %vm1149_vm0, %v1148_v0  ;;  %1096 = vmatprep.mubr.msk.bf16.mxu1 %vm1149_vm0, %v1148_v0 }
  0x4e   :  { %1045 = vmatmul.mubr.msk.bf16.gmra.mrb[32].mxu0 %vm214_vm2, %v1139_v21  ;;  %1097 = vmatmul.mubr.msk.bf16.gmra.mrb[32].mxu1 %vm214_vm2, %v1140_v22 }
  0x4f   :  { %1048 = vmatprep.mubr.msk.bf16.mxu0 %vm1149_vm0, %v1148_v0  ;;  %1100 = vmatprep.mubr.msk.bf16.mxu1 %vm1149_vm0, %v1148_v0 }
  0x56   :  { %1049 = vmatmul.mubr.msk.bf16.gmra.mrb[36].mxu0 %vm214_vm2, %v1141_v23  ;;  %1101 = vmatmul.mubr.msk.bf16.gmra.mrb[36].mxu1 %vm214_vm2, %v1142_v24 }
  0x57   :  { %1052 = vmatprep.mubr.msk.bf16.mxu0 %vm1149_vm0, %v1148_v0  ;;  %1104 = vmatprep.mubr.msk.bf16.mxu1 %vm1149_vm0, %v1148_v0 }
  0x5e   :  { %1053 = vmatmul.mubr.msk.bf16.gmra.mrb[40].mxu0 %vm214_vm2, %v1143_v25  ;;  %1105 = vmatmul.mubr.msk.bf16.gmra.mrb[40].mxu1 %vm214_vm2, %v1144_v26 }
  0x5f   :  { %1056 = vmatprep.mubr.msk.bf16.mxu0 %vm1149_vm0, %v1148_v0  ;;  %1108 = vmatprep.mubr.msk.bf16.mxu1 %vm1149_vm0, %v1148_v0 }
  0x66   :  { %1057 = vmatmul.mubr.msk.bf16.gmra.mrb[44].mxu0 %vm214_vm2, %v1145_v27  ;;  %1109 = vmatmul.mubr.msk.bf16.gmra.mrb[44].mxu1 %vm214_vm2, %v1146_v28 }
  0x67   :  { %1060 = vmatprep.mubr.msk.bf16.mxu0 %vm1149_vm0, %v1148_v0 }
  0x6e   :  { %1061 = vmatmul.mubr.msk.bf16.gmra.mrb[48].mxu0 %vm214_vm2, %v1147_v29 }
  0xe1   :  { %v328_v31 = vpop.f32.mrb[0].mxu0  ;;  %v432_v32 = vpop.f32.mrb[0].mxu1 }
  0xe2   :  { %v329_v33 = vadd.f32 %v1338_v30, %v328_v31  ;;  %v1014_v34 = vpop.f32.mrb[1].mxu0  ;;  %v433_v35 = vadd.f32 %v1338_v30, %v432_v32  ;;  %v1066_v36 = vpop.f32.mrb[1].mxu1 }
  0xe3   :  { %v331_v37 = vpop.f32.mrb[2].mxu0  ;;  %v435_v38 = vpop.f32.mrb[2].mxu1 }
  0xe4   :  { %v526_v39 = vmax.f32 %v329_v33, 0.0  ;;  %v332_v40 = vadd.f32 %v1338_v30, %v331_v37  ;;  %v1015_v41 = vpop.f32.mrb[3].mxu0  ;;  %v552_v42 = vmax.f32 %v433_v35, 0.0  ;;  %v436_v43 = vadd.f32 %v1338_v30, %v435_v38  ;;  %v1067_v44 = vpop.f32.mrb[3].mxu1 }
  0xe6   :  { %v929_v45 = vpack.c.bf16 %v526_v39, %v526_v39  ;;  %v527_v46 = vmax.f32 %v332_v40, 0.0  ;;  %v955_v47 = vpack.c.bf16 %v552_v42, %v552_v42  ;;  %v553_v48 = vmax.f32 %v436_v43, 0.0 }
  0xe8   :  { %773 = vst.msk [vmem:[%s1588_s3] sm:$0xf] %vm772_vm3, %v929_v45  ;;  %v930_v49 = vpack.c.bf16 %v527_v46, %v527_v46  ;;  %799 = vst.msk [vmem:[%s1588_s3 + $0x68] sm:$0xf] %vm772_vm3, %v955_v47  ;;  %v956_v50 = vpack.c.bf16 %v553_v48, %v553_v48 }
  0xe9   :  { %v336_v51 = vpop.f32.mrb[4].mxu0  ;;  %v440_v52 = vpop.f32.mrb[4].mxu1 }
  0xea   :  { %774 = vst.msk [vmem:[%s1588_s3 + $0x4] sm:$0xf] %vm772_vm3, %v930_v49  ;;  %v337_v53 = vadd.f32 %v1338_v30, %v336_v51  ;;  %v1018_v54 = vpop.f32.mrb[5].mxu0  ;;  %800 = vst.msk [vmem:[%s1588_s3 + $0x6c] sm:$0xf] %vm772_vm3, %v956_v50  ;;  %v441_v55 = vadd.f32 %v1338_v30, %v440_v52  ;;  %v1070_v56 = vpop.f32.mrb[5].mxu1 }
  0xeb   :  { %v339_v57 = vpop.f32.mrb[6].mxu0  ;;  %v443_v58 = vpop.f32.mrb[6].mxu1 }
  0xec   :  { %v528_v59 = vmax.f32 %v337_v53, 0.0  ;;  %v340_v60 = vadd.f32 %v1338_v30, %v339_v57  ;;  %v1019_v61 = vpop.f32.mrb[7].mxu0  ;;  %v554_v62 = vmax.f32 %v441_v55, 0.0  ;;  %v444_v63 = vadd.f32 %v1338_v30, %v443_v58  ;;  %v1071_v0 = vpop.f32.mrb[7].mxu1 }
  0xee   :  { %v931_v1 = vpack.c.bf16 %v528_v59, %v528_v59  ;;  %v529_v2 = vmax.f32 %v340_v60, 0.0  ;;  %v957_v3 = vpack.c.bf16 %v554_v62, %v554_v62  ;;  %v555_v4 = vmax.f32 %v444_v63, 0.0 }
  0xf0   :  { %775 = vst.msk [vmem:[%s1588_s3 + $0x8] sm:$0xf] %vm772_vm3, %v931_v1  ;;  %v932_v5 = vpack.c.bf16 %v529_v2, %v529_v2  ;;  %801 = vst.msk [vmem:[%s1588_s3 + $0x70] sm:$0xf] %vm772_vm3, %v957_v3  ;;  %v958_v6 = vpack.c.bf16 %v555_v4, %v555_v4 }
  0xf1   :  { %v344_v7 = vpop.f32.mrb[8].mxu0  ;;  %v448_v8 = vpop.f32.mrb[8].mxu1 }
  0xf2   :  { %776 = vst.msk [vmem:[%s1588_s3 + $0xc] sm:$0xf] %vm772_vm3, %v932_v5  ;;  %v345_v9 = vadd.f32 %v1338_v30, %v344_v7  ;;  %v1022_v10 = vpop.f32.mrb[9].mxu0  ;;  %802 = vst.msk [vmem:[%s1588_s3 + $0x74] sm:$0xf] %vm772_vm3, %v958_v6  ;;  %v449_v11 = vadd.f32 %v1338_v30, %v448_v8  ;;  %v1074_v12 = vpop.f32.mrb[9].mxu1 }
  0xf3   :  { %v347_v13 = vpop.f32.mrb[10].mxu0  ;;  %v451_v14 = vpop.f32.mrb[10].mxu1 }
  0xf4   :  { %v530_v15 = vmax.f32 %v345_v9, 0.0  ;;  %v348_v16 = vadd.f32 %v1338_v30, %v347_v13  ;;  %v1023_v17 = vpop.f32.mrb[11].mxu0  ;;  %v556_v18 = vmax.f32 %v449_v11, 0.0  ;;  %v452_v19 = vadd.f32 %v1338_v30, %v451_v14  ;;  %v1075_v20 = vpop.f32.mrb[11].mxu1 }
  0xf6   :  { %v933_v21 = vpack.c.bf16 %v530_v15, %v530_v15  ;;  %v531_v22 = vmax.f32 %v348_v16, 0.0  ;;  %v959_v23 = vpack.c.bf16 %v556_v18, %v556_v18  ;;  %v557_v24 = vmax.f32 %v452_v19, 0.0 }
  0xf8   :  { %777 = vst.msk [vmem:[%s1588_s3 + $0x10] sm:$0xf] %vm772_vm3, %v933_v21  ;;  %v934_v25 = vpack.c.bf16 %v531_v22, %v531_v22  ;;  %803 = vst.msk [vmem:[%s1588_s3 + $0x78] sm:$0xf] %vm772_vm3, %v959_v23  ;;  %v960_v26 = vpack.c.bf16 %v557_v24, %v557_v24 }
  0xf9   :  { %v352_v27 = vpop.f32.mrb[12].mxu0  ;;  %v456_v28 = vpop.f32.mrb[12].mxu1 }
  0xfa   :  { %778 = vst.msk [vmem:[%s1588_s3 + $0x14] sm:$0xf] %vm772_vm3, %v934_v25  ;;  %v353_v29 = vadd.f32 %v1338_v30, %v352_v27  ;;  %v1026_v31 = vpop.f32.mrb[13].mxu0  ;;  %804 = vst.msk [vmem:[%s1588_s3 + $0x7c] sm:$0xf] %vm772_vm3, %v960_v26  ;;  %v457_v32 = vadd.f32 %v1338_v30, %v456_v28  ;;  %v1078_v33 = vpop.f32.mrb[13].mxu1 }
  0xfb   :  { %v355_v34 = vpop.f32.mrb[14].mxu0  ;;  %v459_v35 = vpop.f32.mrb[14].mxu1 }
  0xfc   :  { %v532_v36 = vmax.f32 %v353_v29, 0.0  ;;  %v356_v37 = vadd.f32 %v1338_v30, %v355_v34  ;;  %v1027_v38 = vpop.f32.mrb[15].mxu0  ;;  %v558_v39 = vmax.f32 %v457_v32, 0.0  ;;  %v460_v40 = vadd.f32 %v1338_v30, %v459_v35  ;;  %v1079_v41 = vpop.f32.mrb[15].mxu1 }
  0xfe   :  { %v935_v42 = vpack.c.bf16 %v532_v36, %v532_v36  ;;  %v533_v43 = vmax.f32 %v356_v37, 0.0  ;;  %v961_v44 = vpack.c.bf16 %v558_v39, %v558_v39  ;;  %v559_v45 = vmax.f32 %v460_v40, 0.0 }
 0x100   :  { %779 = vst.msk [vmem:[%s1588_s3 + $0x18] sm:$0xf] %vm772_vm3, %v935_v42  ;;  %v936_v46 = vpack.c.bf16 %v533_v43, %v533_v43  ;;  %805 = vst.msk [vmem:[%s1588_s3 + $0x80] sm:$0xf] %vm772_vm3, %v961_v44  ;;  %v962_v47 = vpack.c.bf16 %v559_v45, %v559_v45 }
 0x101   :  { %v360_v48 = vpop.f32.mrb[16].mxu0  ;;  %v464_v49 = vpop.f32.mrb[16].mxu1 }
 0x102   :  { %780 = vst.msk [vmem:[%s1588_s3 + $0x1c] sm:$0xf] %vm772_vm3, %v936_v46  ;;  %v361_v50 = vadd.f32 %v1338_v30, %v360_v48  ;;  %v1030_v51 = vpop.f32.mrb[17].mxu0  ;;  %806 = vst.msk [vmem:[%s1588_s3 + $0x84] sm:$0xf] %vm772_vm3, %v962_v47  ;;  %v465_v52 = vadd.f32 %v1338_v30, %v464_v49  ;;  %v1082_v53 = vpop.f32.mrb[17].mxu1 }
 0x103   :  { %v363_v54 = vpop.f32.mrb[18].mxu0  ;;  %v467_v55 = vpop.f32.mrb[18].mxu1 }
 0x104   :  { %v534_v56 = vmax.f32 %v361_v50, 0.0  ;;  %v364_v57 = vadd.f32 %v1338_v30, %v363_v54  ;;  %v1031_v58 = vpop.f32.mrb[19].mxu0  ;;  %v560_v59 = vmax.f32 %v465_v52, 0.0  ;;  %v468_v60 = vadd.f32 %v1338_v30, %v467_v55  ;;  %v1083_v61 = vpop.f32.mrb[19].mxu1 }
 0x106   :  { %v937_v62 = vpack.c.bf16 %v534_v56, %v534_v56  ;;  %v535_v63 = vmax.f32 %v364_v57, 0.0  ;;  %v963_v0 = vpack.c.bf16 %v560_v59, %v560_v59  ;;  %v561_v1 = vmax.f32 %v468_v60, 0.0 }
 0x108   :  { %781 = vst.msk [vmem:[%s1588_s3 + $0x20] sm:$0xf] %vm772_vm3, %v937_v62  ;;  %v938_v2 = vpack.c.bf16 %v535_v63, %v535_v63  ;;  %807 = vst.msk [vmem:[%s1588_s3 + $0x88] sm:$0xf] %vm772_vm3, %v963_v0  ;;  %v964_v3 = vpack.c.bf16 %v561_v1, %v561_v1 }
 0x109   :  { %v368_v4 = vpop.f32.mrb[20].mxu0  ;;  %v472_v5 = vpop.f32.mrb[20].mxu1 }
 0x10a   :  { %782 = vst.msk [vmem:[%s1588_s3 + $0x24] sm:$0xf] %vm772_vm3, %v938_v2  ;;  %v369_v6 = vadd.f32 %v1338_v30, %v368_v4  ;;  %v1034_v7 = vpop.f32.mrb[21].mxu0  ;;  %808 = vst.msk [vmem:[%s1588_s3 + $0x8c] sm:$0xf] %vm772_vm3, %v964_v3  ;;  %v473_v8 = vadd.f32 %v1338_v30, %v472_v5  ;;  %v1086_v9 = vpop.f32.mrb[21].mxu1 }
 0x10b   :  { %v371_v10 = vpop.f32.mrb[22].mxu0  ;;  %v475_v11 = vpop.f32.mrb[22].mxu1 }
 0x10c   :  { %v536_v12 = vmax.f32 %v369_v6, 0.0  ;;  %v372_v13 = vadd.f32 %v1338_v30, %v371_v10  ;;  %v1035_v14 = vpop.f32.mrb[23].mxu0  ;;  %v562_v15 = vmax.f32 %v473_v8, 0.0  ;;  %v476_v16 = vadd.f32 %v1338_v30, %v475_v11  ;;  %v1087_v17 = vpop.f32.mrb[23].mxu1 }
 0x10e   :  { %v939_v18 = vpack.c.bf16 %v536_v12, %v536_v12  ;;  %v537_v19 = vmax.f32 %v372_v13, 0.0  ;;  %v965_v20 = vpack.c.bf16 %v562_v15, %v562_v15  ;;  %v563_v21 = vmax.f32 %v476_v16, 0.0 }
 0x110   :  { %783 = vst.msk [vmem:[%s1588_s3 + $0x28] sm:$0xf] %vm772_vm3, %v939_v18  ;;  %v940_v22 = vpack.c.bf16 %v537_v19, %v537_v19  ;;  %809 = vst.msk [vmem:[%s1588_s3 + $0x90] sm:$0xf] %vm772_vm3, %v965_v20  ;;  %v966_v23 = vpack.c.bf16 %v563_v21, %v563_v21 }
 0x111   :  { %v376_v24 = vpop.f32.mrb[24].mxu0  ;;  %v480_v25 = vpop.f32.mrb[24].mxu1 }
 0x112   :  { %784 = vst.msk [vmem:[%s1588_s3 + $0x2c] sm:$0xf] %vm772_vm3, %v940_v22  ;;  %v377_v26 = vadd.f32 %v1338_v30, %v376_v24  ;;  %v1038_v27 = vpop.f32.mrb[25].mxu0  ;;  %810 = vst.msk [vmem:[%s1588_s3 + $0x94] sm:$0xf] %vm772_vm3, %v966_v23  ;;  %v481_v28 = vadd.f32 %v1338_v30, %v480_v25  ;;  %v1090_v29 = vpop.f32.mrb[25].mxu1 }
 0x113   :  { %v379_v31 = vpop.f32.mrb[26].mxu0  ;;  %v483_v32 = vpop.f32.mrb[26].mxu1 }
 0x114   :  { %v538_v33 = vmax.f32 %v377_v26, 0.0  ;;  %v380_v34 = vadd.f32 %v1338_v30, %v379_v31  ;;  %v1039_v35 = vpop.f32.mrb[27].mxu0  ;;  %v564_v36 = vmax.f32 %v481_v28, 0.0  ;;  %v484_v37 = vadd.f32 %v1338_v30, %v483_v32  ;;  %v1091_v38 = vpop.f32.mrb[27].mxu1 }
 0x116   :  { %v941_v39 = vpack.c.bf16 %v538_v33, %v538_v33  ;;  %v539_v40 = vmax.f32 %v380_v34, 0.0  ;;  %v967_v41 = vpack.c.bf16 %v564_v36, %v564_v36  ;;  %v565_v42 = vmax.f32 %v484_v37, 0.0 }
 0x118   :  { %785 = vst.msk [vmem:[%s1588_s3 + $0x30] sm:$0xf] %vm772_vm3, %v941_v39  ;;  %v942_v43 = vpack.c.bf16 %v539_v40, %v539_v40  ;;  %811 = vst.msk [vmem:[%s1588_s3 + $0x98] sm:$0xf] %vm772_vm3, %v967_v41  ;;  %v968_v44 = vpack.c.bf16 %v565_v42, %v565_v42 }
 0x119   :  { %v384_v45 = vpop.f32.mrb[28].mxu0  ;;  %v488_v46 = vpop.f32.mrb[28].mxu1 }
 0x11a   :  { %786 = vst.msk [vmem:[%s1588_s3 + $0x34] sm:$0xf] %vm772_vm3, %v942_v43  ;;  %v385_v47 = vadd.f32 %v1338_v30, %v384_v45  ;;  %v1042_v48 = vpop.f32.mrb[29].mxu0  ;;  %812 = vst.msk [vmem:[%s1588_s3 + $0x9c] sm:$0xf] %vm772_vm3, %v968_v44  ;;  %v489_v49 = vadd.f32 %v1338_v30, %v488_v46  ;;  %v1094_v50 = vpop.f32.mrb[29].mxu1 }
 0x11b   :  { %v387_v51 = vpop.f32.mrb[30].mxu0  ;;  %v491_v52 = vpop.f32.mrb[30].mxu1 }
 0x11c   :  { %v540_v53 = vmax.f32 %v385_v47, 0.0  ;;  %v388_v54 = vadd.f32 %v1338_v30, %v387_v51  ;;  %v1043_v55 = vpop.f32.mrb[31].mxu0  ;;  %v566_v56 = vmax.f32 %v489_v49, 0.0  ;;  %v492_v57 = vadd.f32 %v1338_v30, %v491_v52  ;;  %v1095_v58 = vpop.f32.mrb[31].mxu1 }
 0x11e   :  { %v943_v59 = vpack.c.bf16 %v540_v53, %v540_v53  ;;  %v541_v60 = vmax.f32 %v388_v54, 0.0  ;;  %v969_v61 = vpack.c.bf16 %v566_v56, %v566_v56  ;;  %v567_v62 = vmax.f32 %v492_v57, 0.0 }
 0x120   :  { %787 = vst.msk [vmem:[%s1588_s3 + $0x38] sm:$0xf] %vm772_vm3, %v943_v59  ;;  %v944_v63 = vpack.c.bf16 %v541_v60, %v541_v60  ;;  %813 = vst.msk [vmem:[%s1588_s3 + $0xa0] sm:$0xf] %vm772_vm3, %v969_v61  ;;  %v970_v0 = vpack.c.bf16 %v567_v62, %v567_v62 }
 0x121   :  { %v392_v1 = vpop.f32.mrb[32].mxu0  ;;  %v496_v2 = vpop.f32.mrb[32].mxu1 }
 0x122   :  { %788 = vst.msk [vmem:[%s1588_s3 + $0x3c] sm:$0xf] %vm772_vm3, %v944_v63  ;;  %v393_v3 = vadd.f32 %v1338_v30, %v392_v1  ;;  %v1046_v4 = vpop.f32.mrb[33].mxu0  ;;  %814 = vst.msk [vmem:[%s1588_s3 + $0xa4] sm:$0xf] %vm772_vm3, %v970_v0  ;;  %v497_v5 = vadd.f32 %v1338_v30, %v496_v2  ;;  %v1098_v6 = vpop.f32.mrb[33].mxu1 }
 0x123   :  { %v395_v7 = vpop.f32.mrb[34].mxu0  ;;  %v499_v8 = vpop.f32.mrb[34].mxu1 }
 0x124   :  { %v542_v9 = vmax.f32 %v393_v3, 0.0  ;;  %v396_v10 = vadd.f32 %v1338_v30, %v395_v7  ;;  %v1047_v11 = vpop.f32.mrb[35].mxu0  ;;  %v568_v12 = vmax.f32 %v497_v5, 0.0  ;;  %v500_v13 = vadd.f32 %v1338_v30, %v499_v8  ;;  %v1099_v14 = vpop.f32.mrb[35].mxu1 }
 0x126   :  { %v945_v15 = vpack.c.bf16 %v542_v9, %v542_v9  ;;  %v543_v16 = vmax.f32 %v396_v10, 0.0  ;;  %v971_v17 = vpack.c.bf16 %v568_v12, %v568_v12  ;;  %v569_v18 = vmax.f32 %v500_v13, 0.0 }
 0x128   :  { %789 = vst.msk [vmem:[%s1588_s3 + $0x40] sm:$0xf] %vm772_vm3, %v945_v15  ;;  %v946_v19 = vpack.c.bf16 %v543_v16, %v543_v16  ;;  %815 = vst.msk [vmem:[%s1588_s3 + $0xa8] sm:$0xf] %vm772_vm3, %v971_v17  ;;  %v972_v20 = vpack.c.bf16 %v569_v18, %v569_v18 }
 0x129   :  { %v400_v21 = vpop.f32.mrb[36].mxu0  ;;  %v504_v22 = vpop.f32.mrb[36].mxu1 }
 0x12a   :  { %790 = vst.msk [vmem:[%s1588_s3 + $0x44] sm:$0xf] %vm772_vm3, %v946_v19  ;;  %v401_v23 = vadd.f32 %v1338_v30, %v400_v21  ;;  %v1050_v24 = vpop.f32.mrb[37].mxu0  ;;  %816 = vst.msk [vmem:[%s1588_s3 + $0xac] sm:$0xf] %vm772_vm3, %v972_v20  ;;  %v505_v25 = vadd.f32 %v1338_v30, %v504_v22  ;;  %v1102_v26 = vpop.f32.mrb[37].mxu1 }
 0x12b   :  { %v403_v27 = vpop.f32.mrb[38].mxu0  ;;  %v507_v28 = vpop.f32.mrb[38].mxu1 }
 0x12c   :  { %v544_v29 = vmax.f32 %v401_v23, 0.0  ;;  %v404_v31 = vadd.f32 %v1338_v30, %v403_v27  ;;  %v1051_v32 = vpop.f32.mrb[39].mxu0  ;;  %v570_v33 = vmax.f32 %v505_v25, 0.0  ;;  %v508_v34 = vadd.f32 %v1338_v30, %v507_v28  ;;  %v1103_v35 = vpop.f32.mrb[39].mxu1 }
 0x12e   :  { %v947_v36 = vpack.c.bf16 %v544_v29, %v544_v29  ;;  %v545_v37 = vmax.f32 %v404_v31, 0.0  ;;  %v973_v38 = vpack.c.bf16 %v570_v33, %v570_v33  ;;  %v571_v39 = vmax.f32 %v508_v34, 0.0 }
 0x130   :  { %791 = vst.msk [vmem:[%s1588_s3 + $0x48] sm:$0xf] %vm772_vm3, %v947_v36  ;;  %v948_v40 = vpack.c.bf16 %v545_v37, %v545_v37  ;;  %817 = vst.msk [vmem:[%s1588_s3 + $0xb0] sm:$0xf] %vm772_vm3, %v973_v38  ;;  %v974_v41 = vpack.c.bf16 %v571_v39, %v571_v39 }
 0x131   :  { %v408_v42 = vpop.f32.mrb[40].mxu0  ;;  %v512_v43 = vpop.f32.mrb[40].mxu1 }
 0x132   :  { %792 = vst.msk [vmem:[%s1588_s3 + $0x4c] sm:$0xf] %vm772_vm3, %v948_v40  ;;  %v409_v44 = vadd.f32 %v1338_v30, %v408_v42  ;;  %v1054_v45 = vpop.f32.mrb[41].mxu0  ;;  %818 = vst.msk [vmem:[%s1588_s3 + $0xb4] sm:$0xf] %vm772_vm3, %v974_v41  ;;  %v513_v46 = vadd.f32 %v1338_v30, %v512_v43  ;;  %v1106_v47 = vpop.f32.mrb[41].mxu1 }
 0x133   :  { %v411_v48 = vpop.f32.mrb[42].mxu0  ;;  %v515_v49 = vpop.f32.mrb[42].mxu1 }
 0x134   :  { %v546_v50 = vmax.f32 %v409_v44, 0.0  ;;  %v412_v51 = vadd.f32 %v1338_v30, %v411_v48  ;;  %v1055_v52 = vpop.f32.mrb[43].mxu0  ;;  %v572_v53 = vmax.f32 %v513_v46, 0.0  ;;  %v516_v54 = vadd.f32 %v1338_v30, %v515_v49  ;;  %v1107_v55 = vpop.f32.mrb[43].mxu1 }
 0x136   :  { %v949_v56 = vpack.c.bf16 %v546_v50, %v546_v50  ;;  %v547_v57 = vmax.f32 %v412_v51, 0.0  ;;  %v975_v58 = vpack.c.bf16 %v572_v53, %v572_v53  ;;  %v573_v59 = vmax.f32 %v516_v54, 0.0 }
 0x138   :  { %793 = vst.msk [vmem:[%s1588_s3 + $0x50] sm:$0xf] %vm772_vm3, %v949_v56  ;;  %v950_v60 = vpack.c.bf16 %v547_v57, %v547_v57  ;;  %819 = vst.msk [vmem:[%s1588_s3 + $0xb8] sm:$0xf] %vm772_vm3, %v975_v58  ;;  %v976_v61 = vpack.c.bf16 %v573_v59, %v573_v59 }
 0x139   :  { %v416_v62 = vpop.f32.mrb[44].mxu0  ;;  %v520_v63 = vpop.f32.mrb[44].mxu1 }
 0x13a   :  { %794 = vst.msk [vmem:[%s1588_s3 + $0x54] sm:$0xf] %vm772_vm3, %v950_v60  ;;  %v417_v0 = vadd.f32 %v1338_v30, %v416_v62  ;;  %v1058_v1 = vpop.f32.mrb[45].mxu0  ;;  %820 = vst.msk [vmem:[%s1588_s3 + $0xbc] sm:$0xf] %vm772_vm3, %v976_v61  ;;  %v521_v2 = vadd.f32 %v1338_v30, %v520_v63  ;;  %v1110_v3 = vpop.f32.mrb[45].mxu1 }
 0x13b   :  { %v419_v4 = vpop.f32.mrb[46].mxu0  ;;  %v523_v5 = vpop.f32.mrb[46].mxu1 }
 0x13c   :  { %v548_v6 = vmax.f32 %v417_v0, 0.0  ;;  %v420_v7 = vadd.f32 %v1338_v30, %v419_v4  ;;  %v1059_v8 = vpop.f32.mrb[47].mxu0  ;;  %v574_v9 = vmax.f32 %v521_v2, 0.0  ;;  %v1111_v10 = vpop.f32.mrb[47].mxu1 }
 0x13e   :  { %v951_v11 = vpack.c.bf16 %v548_v6, %v548_v6  ;;  %v549_v12 = vmax.f32 %v420_v7, 0.0  ;;  %v977_v13 = vpack.c.bf16 %v574_v9, %v574_v9 }
 0x140   :  { %795 = vst.msk [vmem:[%s1588_s3 + $0x58] sm:$0xf] %vm772_vm3, %v951_v11  ;;  %v952_v14 = vpack.c.bf16 %v549_v12, %v549_v12  ;;  %821 = vst.msk [vmem:[%s1588_s3 + $0xc0] sm:$0xf] %vm772_vm3, %v977_v13 }
 0x141   :  { %v424_v15 = vpop.f32.mrb[48].mxu0 }
 0x142   :  { %796 = vst.msk [vmem:[%s1588_s3 + $0x5c] sm:$0xf] %vm772_vm3, %v952_v14  ;;  %v425_v16 = vadd.f32 %v1338_v30, %v424_v15  ;;  %v1062_v17 = vpop.f32.mrb[49].mxu0 }
 0x143   :  { %v427_v18 = vpop.f32.mrb[50].mxu0 }
 0x144   :  { %v550_v19 = vmax.f32 %v425_v16, 0.0  ;;  %v428_v20 = vadd.f32 %v1338_v30, %v427_v18  ;;  %v1063_v21 = vpop.f32.mrb[51].mxu0 }
 0x146   :  { %v953_v22 = vpack.c.bf16 %v550_v19, %v550_v19  ;;  %v551_v23 = vmax.f32 %v428_v20, 0.0 }
 0x148   :  { %797 = vst.msk [vmem:[%s1588_s3 + $0x60] sm:$0xf] %vm772_vm3, %v953_v22  ;;  %v954_v24 = vpack.c.bf16 %v551_v23, %v551_v23 }
 0x14a   :  { %798 = vst.msk [vmem:[%s1588_s3 + $0x64] sm:$0xf] %vm772_vm3, %v954_v24 }

// kernel: cnn_gaussian_actor_forward.3
= control target key start
LH: loop header
LB: loop body
LE: loop exit
PB: predicated region body
PF: predicated region fallthrough
CT: control target
= control target key end

     0   :  { %v6424_v21 = vmov 1966171168   ;;  %v851_v23 = vlaneseq  ;;  %vm6426_vm0 = vmmov 0   ;;  %vm4597_vm1 = vcmask 523264   ;;  %s7902_s1 = inlined_call_operand.vmem [shape: bf16[6272,64], index: 1, kind: input, shape index: {}]   ;;  %s7903_s0 = inlined_call_operand.vmem [shape: bf16[2,6272], index: 0, kind: input, shape index: {}]   ;;  %s7904_s2 = inlined_call_operand.vmem [shape: f32[1,64], index: 2, kind: input, shape index: {}]   ;;  %s7905_s3 = inlined_call_operand.vmem [shape: bf16[64,64], index: 3, kind: input, shape index: {}]   ;;  %s7906_s5 = inlined_call_operand.vmem [shape: bf16[64,256], index: 5, kind: input, shape index: {}]   ;;  %s7907_s7 = inlined_call_operand.vmem [shape: bf16[256,128], index: 7, kind: input, shape index: {}]   ;;  %s7908_s4 = inlined_call_operand.vmem [shape: f32[1,64], index: 4, kind: input, shape index: {}]   ;;  %s7909_s6 = inlined_call_operand.vmem [shape: f32[1,256], index: 6, kind: input, shape index: {}]   ;;  %s7910_s8 = inlined_call_operand.vmem [shape: f32[1,128], index: 8, kind: input, shape index: {}]   ;;  %s7911_s11 = inlined_call_operand.vmem [shape: f32[2,128], index: 11, kind: input, shape index: {}]   ;;  %s7912_s9 = inlined_call_operand.vmem [shape: f32[1,128], index: 9, kind: input, shape index: {}]   ;;  %s7913_s10 = inlined_call_operand.vmem [shape: f32[1,128], index: 10, kind: input, shape index: {}]   ;;  %s7914_s12 = inlined_call_operand.vmem [shape: f32[2,128], index: 12, kind: output, shape index: {}]  }
   0x1   :  { %v5988_v0 = vld [vmem:[%s7902_s1 + $0x40] sm:$0xff]   ;;  %v5992_v4 = vld [vmem:[%s7902_s1 + $0x48] sm:$0xff]   ;;  %v5996_v8 = vld [vmem:[%s7902_s1 + $0x50] sm:$0xff]   ;;  %v849_v22 = vunpack.c.l.s4 %v6424_v21  ;;  %vm4947_vm2 = vcmask 1041408  }
   0x2   :  { %v5989_v1 = vld [vmem:[%s7902_s1] sm:$0xff]   ;;  %5388 = vmatprep.subr.bf16.mxu0 %v5988_v0  ;;  %v5993_v5 = vld [vmem:[%s7902_s1 + $0x8] sm:$0xff]   ;;  %v5997_v9 = vld [vmem:[%s7902_s1 + $0x10] sm:$0xff]   ;;  %v6569_v29 = vshrl.u32 %v851_v23, 7 }
   0x3   :  { %v5990_v2 = vld [vmem:[%s7902_s1 + $0xc0] sm:$0xff]   ;;  %5389 = vmatpush3.bf16.msra.mxu0 %v5989_v1  ;;  %v5994_v6 = vld [vmem:[%s7902_s1 + $0xc8] sm:$0xff]   ;;  %v5998_v10 = vld [vmem:[%s7902_s1 + $0xd0] sm:$0xff]   ;;  %v850_v28 = vunpack.c.0.s8 %v849_v22 }
   0x4   :  { %v5991_v3 = vld [vmem:[%s7902_s1 + $0x80] sm:$0xff]   ;;  %5410 = vmatprep.subr.bf16.mxu1 %v5990_v2  ;;  %5390 = vmatprep.subr.bf16.mxu0 %v5992_v4  ;;  %v5995_v7 = vld [vmem:[%s7902_s1 + $0x88] sm:$0xff]   ;;  %v5999_v11 = vld [vmem:[%s7902_s1 + $0x90] sm:$0xff]  }
   0x5   :  { %5411 = vmatpush3.bf16.msra.mxu1 %v5991_v3  ;;  %v6000_v12 = vld [vmem:[%s7902_s1 + $0x58] sm:$0xff]   ;;  %v6004_v16 = vld [vmem:[%s7902_s1 + $0x60] sm:$0xff]   ;;  %v6008_v20 = vld [vmem:[%s7902_s1 + $0x68] sm:$0xff]   ;;  %v6584_v34 = vsub.s32 %v850_v28, %v6569_v29 }
   0x6   :  { %5412 = vmatprep.subr.bf16.mxu1 %v5994_v6  ;;  %v6001_v13 = vld [vmem:[%s7902_s1 + $0x18] sm:$0xff]   ;;  %v6005_v17 = vld [vmem:[%s7902_s1 + $0x20] sm:$0xff]   ;;  %v6009_v24 = vld [vmem:[%s7902_s1 + $0x28] sm:$0xff]  }
   0x7   :  { %5391 = vmatpush3.bf16.msra.mxu0 %v5993_v5  ;;  %v6002_v14 = vld [vmem:[%s7902_s1 + $0xd8] sm:$0xff]   ;;  %v6006_v18 = vld [vmem:[%s7902_s1 + $0xe0] sm:$0xff]   ;;  %v6010_v25 = vld [vmem:[%s7902_s1 + $0xe8] sm:$0xff]  }
   0x8   :  { %5392 = vmatprep.subr.bf16.mxu0 %v5996_v8  ;;  %v6003_v15 = vld [vmem:[%s7902_s1 + $0x98] sm:$0xff]   ;;  %v6007_v19 = vld [vmem:[%s7902_s1 + $0xa0] sm:$0xff]   ;;  %v6011_v26 = vld [vmem:[%s7902_s1 + $0xa8] sm:$0xff]  }
   0x9   :  { %5413 = vmatpush3.bf16.msra.mxu1 %v5995_v7  ;;  %v6012_v27 = vld [vmem:[%s7902_s1 + $0x70] sm:$0xff]   ;;  %v6016_v33 = vld [vmem:[%s7902_s1 + $0x78] sm:$0xff]   ;;  %v42_v37 = vld [vmem:[%s7903_s0] sm:$0xff] }
   0xa   :  { %5414 = vmatprep.subr.bf16.mxu1 %v5998_v10  ;;  %v6013_v30 = vld [vmem:[%s7902_s1 + $0x30] sm:$0xff]   ;;  %v6017_v35 = vld [vmem:[%s7902_s1 + $0x38] sm:$0xff]   ;;  %v847_v38 = vcombine.high %v42_v37, %v42_v37  ;;  %v854_v39 = vrot.slane %v42_v37, %v6584_v34  ;;  %v6021_v41 = vld [vmem:[%s7902_s1 + $0x140] sm:$0xff]  }
   0xb   :  { %5393 = vmatpush3.bf16.msra.mxu0 %v5997_v9  ;;  %v6014_v31 = vld [vmem:[%s7902_s1 + $0xf0] sm:$0xff]   ;;  %v6018_v36 = vld [vmem:[%s7902_s1 + $0xf8] sm:$0xff]   ;;  %v6022_v44 = vld [vmem:[%s7902_s1 + $0x100] sm:$0xff]  }
   0xc   :  { %5394 = vmatprep.subr.bf16.mxu0 %v6000_v12  ;;  %v6015_v32 = vld [vmem:[%s7902_s1 + $0xb0] sm:$0xff]   ;;  %v6020_v40 = vld [vmem:[%s7902_s1 + $0xb8] sm:$0xff]   ;;  %v862_v42 = vcombine.high %v854_v39, %v854_v39  ;;  %v870_v43 = vrot.slane %v854_v39, %v6584_v34  ;;  %v6607_v45 = vrot.slane %v847_v38, %v6584_v34  ;;  %v6023_v46 = vld [vmem:[%s7902_s1 + $0x1c0] sm:$0xff]  }
   0xd   :  { %5415 = vmatpush3.bf16.msra.mxu1 %v5999_v11  ;;  %v6024_v48 = vld [vmem:[%s7902_s1 + $0x180] sm:$0xff]   ;;  %v6025_v51 = vld [vmem:[%s7902_s1 + $0x148] sm:$0xff]   ;;  %v6029_v58 = vld [vmem:[%s7902_s1 + $0x150] sm:$0xff]  }
   0xe   :  { %5416 = vmatprep.subr.bf16.mxu1 %v6002_v14  ;;  %v884_v47 = vrot.slane %v862_v42, %v6584_v34  ;;  %v863_v49 = vcombine.high %v6607_v45, %v6607_v45  ;;  %v892_v50 = vcombine.high %v870_v43, %v870_v43  ;;  %v6026_v53 = vld [vmem:[%s7902_s1 + $0x108] sm:$0xff]   ;;  %v6030_v59 = vld [vmem:[%s7902_s1 + $0x110] sm:$0xff]   ;;  %v6033_v62 = vld [vmem:[%s7902_s1 + $0x158] sm:$0xff]  }
   0xf   :  { %5395 = vmatpush3.bf16.msra.mxu0 %v6001_v13  ;;  %v6027_v55 = vld [vmem:[%s7902_s1 + $0x1c8] sm:$0xff]   ;;  %v6031_v60 = vld [vmem:[%s7902_s1 + $0x1d0] sm:$0xff]   ;;  %v6034_v63 = vld [vmem:[%s7902_s1 + $0x118] sm:$0xff]  }
  0x10   :  { %5396 = vmatprep.subr.bf16.mxu0 %v6004_v16  ;;  %3588 = vmatprep.mubr.bf16.mxu0 %v884_v47  ;;  %v894_v52 = vcombine.high %v884_v47, %v884_v47  ;;  %v891_v54 = vrot.slane %v863_v49, %v6584_v34  ;;  %v6028_v56 = vld [vmem:[%s7902_s1 + $0x188] sm:$0xff]   ;;  %v6032_v61 = vld [vmem:[%s7902_s1 + $0x190] sm:$0xff]   ;;  %v6035_v0 = vld [vmem:[%s7902_s1 + $0x1d8] sm:$0xff]  }
  0x11   :  { %5417 = vmatpush3.bf16.msra.mxu1 %v6003_v15  ;;  %v6036_v1 = vld [vmem:[%s7902_s1 + $0x198] sm:$0xff]   ;;  %v6037_v2 = vld [vmem:[%s7902_s1 + $0x160] sm:$0xff]   ;;  %v6041_v6 = vld [vmem:[%s7902_s1 + $0x168] sm:$0xff]  }
  0x12   :  { %5418 = vmatprep.subr.bf16.mxu1 %v6006_v18  ;;  %3628 = vmatprep.mubr.bf16.mxu1 %v894_v52  ;;  %v895_v57 = vcombine.high %v891_v54, %v891_v54  ;;  %v6038_v3 = vld [vmem:[%s7902_s1 + $0x120] sm:$0xff]   ;;  %v6042_v7 = vld [vmem:[%s7902_s1 + $0x128] sm:$0xff]   ;;  %v6045_v10 = vld [vmem:[%s7902_s1 + $0x170] sm:$0xff]   ;;  %v877_v18 = vrot.slane %v6607_v45, %v6584_v34 }
  0x13   :  { %5397 = vmatpush3.bf16.msra.mxu0 %v6005_v17  ;;  %v6039_v4 = vld [vmem:[%s7902_s1 + $0x1e0] sm:$0xff]   ;;  %v6043_v8 = vld [vmem:[%s7902_s1 + $0x1e8] sm:$0xff]   ;;  %v6046_v11 = vld [vmem:[%s7902_s1 + $0x130] sm:$0xff]  }
  0x14   :  { %5398 = vmatprep.subr.bf16.mxu0 %v6008_v20  ;;  %v6040_v5 = vld [vmem:[%s7902_s1 + $0x1a0] sm:$0xff]   ;;  %v6044_v9 = vld [vmem:[%s7902_s1 + $0x1a8] sm:$0xff]   ;;  %v6047_v12 = vld [vmem:[%s7902_s1 + $0x1f0] sm:$0xff]  }
  0x15   :  { %5419 = vmatpush3.bf16.msra.mxu1 %v6007_v19  ;;  %v6048_v13 = vld [vmem:[%s7902_s1 + $0x1b0] sm:$0xff]   ;;  %v6049_v14 = vld [vmem:[%s7902_s1 + $0x178] sm:$0xff]   ;;  %v6053_v19 = vld [vmem:[%s7902_s1 + $0x240] sm:$0xff]  }
  0x16   :  { %5420 = vmatprep.subr.bf16.mxu1 %v6010_v25  ;;  %v6050_v15 = vld [vmem:[%s7902_s1 + $0x138] sm:$0xff]   ;;  %v6054_v20 = vld [vmem:[%s7902_s1 + $0x200] sm:$0xff]   ;;  %v6057_v25 = vld [vmem:[%s7902_s1 + $0x248] sm:$0xff]  }
  0x17   :  { %5399 = vmatpush3.bf16.msra.mxu0 %v6009_v24  ;;  %v6051_v16 = vld [vmem:[%s7902_s1 + $0x1f8] sm:$0xff]   ;;  %v6055_v21 = vld [vmem:[%s7902_s1 + $0x2c0] sm:$0xff]   ;;  %v893_v24 = vcombine.high %v877_v18, %v877_v18  ;;  %v6060_v28 = vld [vmem:[%s7902_s1 + $0x288] sm:$0xff]  }
  0x18   :  { %5400 = vmatprep.subr.bf16.mxu0 %v6012_v27  ;;  %v6052_v17 = vld [vmem:[%s7902_s1 + $0x1b8] sm:$0xff]   ;;  %v6056_v22 = vld [vmem:[%s7902_s1 + $0x280] sm:$0xff]   ;;  %v6059_v27 = vld [vmem:[%s7902_s1 + $0x2c8] sm:$0xff]  }
  0x19   :  { %5421 = vmatpush3.bf16.msra.mxu1 %v6011_v26  ;;  %v6058_v26 = vld [vmem:[%s7902_s1 + $0x208] sm:$0xff]   ;;  %v6067_v37 = vld [vmem:[%s7902_s1 + $0x2d8] sm:$0xff]   ;;  %v6069_v39 = vld [vmem:[%s7902_s1 + $0x260] sm:$0xff]  }
  0x1a   :  { %5422 = vmatprep.subr.bf16.mxu1 %v6014_v31  ;;  %v6062_v31 = vld [vmem:[%s7902_s1 + $0x210] sm:$0xff]   ;;  %v6068_v38 = vld [vmem:[%s7902_s1 + $0x298] sm:$0xff]   ;;  %v6072_v42 = vld [vmem:[%s7902_s1 + $0x2a0] sm:$0xff]  }
  0x1b   :  { %5401 = vmatpush3.bf16.msra.mxu0 %v6013_v30  ;;  %v6061_v30 = vld [vmem:[%s7902_s1 + $0x250] sm:$0xff]   ;;  %v6075_v45 = vld [vmem:[%s7902_s1 + $0x2e8] sm:$0xff]   ;;  %v6082_v52 = vld [vmem:[%s7902_s1 + $0x238] sm:$0xff]  }
  0x1c   :  { %5402 = vmatprep.subr.bf16.mxu0 %v6016_v33  ;;  %v6064_v33 = vld [vmem:[%s7902_s1 + $0x290] sm:$0xff]  }
  0x1d   :  { %5423 = vmatpush3.bf16.msra.mxu1 %v6015_v32  ;;  %v6063_v32 = vld [vmem:[%s7902_s1 + $0x2d0] sm:$0xff]  }
  0x1e   :  { %5424 = vmatprep.subr.bf16.mxu1 %v6018_v36  ;;  %v6066_v36 = vld [vmem:[%s7902_s1 + $0x218] sm:$0xff]   ;;  %v6077_v47 = vld [vmem:[%s7902_s1 + $0x270] sm:$0xff]  }
  0x1f   :  { %5403 = vmatpush3.bf16.msra.mxu0 %v6017_v35  ;;  %v6065_v35 = vld [vmem:[%s7902_s1 + $0x258] sm:$0xff]   ;;  %v6079_v49 = vld [vmem:[%s7902_s1 + $0x2f0] sm:$0xff]  }
  0x20   :  { %5432 = vmatprep.subr.bf16.mxu0 %v6021_v41  ;;  %v6071_v41 = vld [vmem:[%s7902_s1 + $0x2e0] sm:$0xff]  }
  0x21   :  { %5425 = vmatpush3.bf16.msra.mxu1 %v6020_v40  ;;  %v6070_v40 = vld [vmem:[%s7902_s1 + $0x220] sm:$0xff]  }
  0x22   :  { %5454 = vmatprep.subr.bf16.mxu1 %v6023_v46  ;;  %3589 = vmatmul.mubr.bf16.vlgmr.msra.gmra.mrb[0].mxu0 %v870_v43  ;;  %v6073_v43 = vld [vmem:[%s7902_s1 + $0x268] sm:$0xff]  }
  0x23   :  { %5433 = vmatpush3.bf16.msra.mxu0 %v6022_v44  ;;  %3668 = vmatprep.mubr.bf16.mxu0 %v891_v54  ;;  %v6074_v44 = vld [vmem:[%s7902_s1 + $0x228] sm:$0xff]  }
  0x24   :  { %3629 = vmatmul.mubr.bf16.vlgmr.msra.gmra.mrb[0].mxu1 %v892_v50  ;;  %5434 = vmatprep.subr.bf16.mxu0 %v6025_v51  ;;  %v6076_v46 = vld [vmem:[%s7902_s1 + $0x2a8] sm:$0xff]   ;;  %v6080_v50 = vld [vmem:[%s7902_s1 + $0x2b0] sm:$0xff]   ;;  %v6081_v51 = vld [vmem:[%s7902_s1 + $0x278] sm:$0xff]  }
  0x25   :  { %5455 = vmatpush3.bf16.msra.mxu1 %v6024_v48  ;;  %3708 = vmatprep.mubr.bf16.mxu1 %v895_v57  ;;  %v6078_v48 = vld [vmem:[%s7902_s1 + $0x230] sm:$0xff]   ;;  %v43_v54 = vld [vmem:[%s7903_s0 + $0x8] sm:$0xff] }
  0x26   :  { %5456 = vmatprep.subr.bf16.mxu1 %v6027_v55  ;;  %v903_v55 = vrot.slane %v43_v54, %v6584_v34  ;;  %v896_v57 = vcombine.high %v43_v54, %v43_v54  ;;  %v6132_v54 = vld [vmem:[%s7902_s1 + $0x4d8] sm:$0xff]  }
  0x27   :  { %5435 = vmatpush3.bf16.msra.mxu0 %v6026_v53  ;;  %v6083_v53 = vld [vmem:[%s7902_s1 + $0x2f8] sm:$0xff]  }
  0x28   :  { %5436 = vmatprep.subr.bf16.mxu0 %v6029_v58  ;;  %v6085_v58 = vld [vmem:[%s7902_s1 + $0x340] sm:$0xff]  }
  0x29   :  { %5457 = vmatpush3.bf16.msra.mxu1 %v6028_v56  ;;  %v6084_v56 = vld [vmem:[%s7902_s1 + $0x2b8] sm:$0xff]  }
  0x2a   :  { %5458 = vmatprep.subr.bf16.mxu1 %v6031_v60  ;;  %v919_v60 = vrot.slane %v903_v55, %v6584_v34 }
  0x2b   :  { %5437 = vmatpush3.bf16.msra.mxu0 %v6030_v59  ;;  %v911_v59 = vcombine.high %v903_v55, %v903_v55  ;;  %v6133_v55 = vld [vmem:[%s7902_s1 + $0x498] sm:$0xff]  }
  0x2c   :  { %5438 = vmatprep.subr.bf16.mxu0 %v6033_v62  ;;  %v6813_v62 = vrot.slane %v896_v57, %v6584_v34  ;;  %v6135_v57 = vld [vmem:[%s7902_s1 + $0x420] sm:$0xff]  }
  0x2d   :  { %5459 = vmatpush3.bf16.msra.mxu1 %v6032_v61  ;;  %v6086_v61 = vld [vmem:[%s7902_s1 + $0x300] sm:$0xff]  }
  0x2e   :  { %5460 = vmatprep.subr.bf16.mxu1 %v6035_v0  ;;  %v933_v0 = vrot.slane %v911_v59, %v6584_v34  ;;  %v6137_v59 = vld [vmem:[%s7902_s1 + $0x4a0] sm:$0xff]  }
  0x2f   :  { %5439 = vmatpush3.bf16.msra.mxu0 %v6034_v63  ;;  %v6087_v63 = vld [vmem:[%s7902_s1 + $0x3c0] sm:$0xff]  }
  0x30   :  { %5440 = vmatprep.subr.bf16.mxu0 %v6037_v2  ;;  %v912_v2 = vcombine.high %v6813_v62, %v6813_v62 }
  0x31   :  { %5461 = vmatpush3.bf16.msra.mxu1 %v6036_v1  ;;  %v6088_v1 = vld [vmem:[%s7902_s1 + $0x380] sm:$0xff]  }
  0x32   :  { %5462 = vmatprep.subr.bf16.mxu1 %v6039_v4  ;;  %v6089_v4 = vld [vmem:[%s7902_s1 + $0x348] sm:$0xff]  }
  0x33   :  { %5441 = vmatpush3.bf16.msra.mxu0 %v6038_v3  ;;  %v941_v3 = vcombine.high %v919_v60, %v919_v60 }
  0x34   :  { %5442 = vmatprep.subr.bf16.mxu0 %v6041_v6  ;;  %v6090_v6 = vld [vmem:[%s7902_s1 + $0x308] sm:$0xff]  }
  0x35   :  { %5463 = vmatpush3.bf16.msra.mxu1 %v6040_v5  ;;  %v943_v5 = vcombine.high %v933_v0, %v933_v0 }
  0x36   :  { %5464 = vmatprep.subr.bf16.mxu1 %v6043_v8  ;;  %v6091_v8 = vld [vmem:[%s7902_s1 + $0x3c8] sm:$0xff]  }
  0x37   :  { %5443 = vmatpush3.bf16.msra.mxu0 %v6042_v7  ;;  %v940_v7 = vrot.slane %v912_v2, %v6584_v34  ;;  %v6144_v2 = vld [vmem:[%s7902_s1 + $0x4f0] sm:$0xff]  }
  0x38   :  { %5444 = vmatprep.subr.bf16.mxu0 %v6045_v10 }
  0x39   :  { %5465 = vmatpush3.bf16.msra.mxu1 %v6044_v9  ;;  %v6092_v9 = vld [vmem:[%s7902_s1 + $0x388] sm:$0xff]   ;;  %v944_v10 = vcombine.high %v940_v7, %v940_v7 }
  0x3a   :  { %5466 = vmatprep.subr.bf16.mxu1 %v6047_v12  ;;  %v6094_v12 = vld [vmem:[%s7902_s1 + $0x310] sm:$0xff]  }
  0x3b   :  { %5445 = vmatpush3.bf16.msra.mxu0 %v6046_v11  ;;  %v6093_v11 = vld [vmem:[%s7902_s1 + $0x350] sm:$0xff]  }
  0x3c   :  { %5446 = vmatprep.subr.bf16.mxu0 %v6049_v14  ;;  %v6096_v14 = vld [vmem:[%s7902_s1 + $0x390] sm:$0xff]  }
  0x3d   :  { %5467 = vmatpush3.bf16.msra.mxu1 %v6048_v13  ;;  %v6095_v13 = vld [vmem:[%s7902_s1 + $0x3d0] sm:$0xff]  }
  0x3e   :  { %5468 = vmatprep.subr.bf16.mxu1 %v6051_v16  ;;  %v6098_v16 = vld [vmem:[%s7902_s1 + $0x318] sm:$0xff]  }
  0x3f   :  { %5447 = vmatpush3.bf16.msra.mxu0 %v6050_v15  ;;  %v6097_v15 = vld [vmem:[%s7902_s1 + $0x358] sm:$0xff]  }
  0x40   :  { %5476 = vmatprep.subr.bf16.mxu0 %v6053_v19  ;;  %v6101_v19 = vld [vmem:[%s7902_s1 + $0x360] sm:$0xff]  }
  0x41   :  { %5469 = vmatpush3.bf16.msra.mxu1 %v6052_v17  ;;  %v6099_v17 = vld [vmem:[%s7902_s1 + $0x3d8] sm:$0xff]  }
  0x42   :  { %3669 = vmatmul.mubr.bf16.vlgmr.msra.gmra.mrb[4].mxu0 %v877_v18  ;;  %5498 = vmatprep.subr.bf16.mxu1 %v6055_v21  ;;  %v6100_v18 = vld [vmem:[%s7902_s1 + $0x398] sm:$0xff]   ;;  %v6103_v21 = vld [vmem:[%s7902_s1 + $0x3e0] sm:$0xff]  }
  0x43   :  { %5477 = vmatpush3.bf16.msra.mxu0 %v6054_v20  ;;  %3748 = vmatprep.mubr.bf16.mxu0 %v933_v0  ;;  %v6102_v20 = vld [vmem:[%s7902_s1 + $0x320] sm:$0xff]   ;;  %v6142_v0 = vld [vmem:[%s7902_s1 + $0x470] sm:$0xff]  }
  0x44   :  { %3709 = vmatmul.mubr.bf16.vlgmr.msra.gmra.mrb[4].mxu1 %v893_v24  ;;  %5478 = vmatprep.subr.bf16.mxu0 %v6057_v25  ;;  %v6105_v24 = vld [vmem:[%s7902_s1 + $0x368] sm:$0xff]  }
  0x45   :  { %5499 = vmatpush3.bf16.msra.mxu1 %v6056_v22  ;;  %3788 = vmatprep.mubr.bf16.mxu1 %v943_v5  ;;  %v6104_v22 = vld [vmem:[%s7902_s1 + $0x3a0] sm:$0xff]   ;;  %v6106_v25 = vld [vmem:[%s7902_s1 + $0x328] sm:$0xff]   ;;  %v6147_v5 = vld [vmem:[%s7902_s1 + $0x438] sm:$0xff]  }
  0x46   :  { %5500 = vmatprep.subr.bf16.mxu1 %v6059_v27  ;;  %v6108_v27 = vld [vmem:[%s7902_s1 + $0x3a8] sm:$0xff]  }
  0x47   :  { %5479 = vmatpush3.bf16.msra.mxu0 %v6058_v26  ;;  %v6107_v26 = vld [vmem:[%s7902_s1 + $0x3e8] sm:$0xff]  }
  0x48   :  { %5480 = vmatprep.subr.bf16.mxu0 %v6061_v30  ;;  %v6110_v30 = vld [vmem:[%s7902_s1 + $0x330] sm:$0xff]  }
  0x49   :  { %5501 = vmatpush3.bf16.msra.mxu1 %v6060_v28  ;;  %v6109_v28 = vld [vmem:[%s7902_s1 + $0x370] sm:$0xff]  }
  0x4a   :  { %5502 = vmatprep.subr.bf16.mxu1 %v6063_v32  ;;  %v6112_v32 = vld [vmem:[%s7902_s1 + $0x3b0] sm:$0xff]  }
  0x4b   :  { %5481 = vmatpush3.bf16.msra.mxu0 %v6062_v31  ;;  %v6111_v31 = vld [vmem:[%s7902_s1 + $0x3f0] sm:$0xff]  }
  0x4c   :  { %5482 = vmatprep.subr.bf16.mxu0 %v6065_v35  ;;  %v6114_v35 = vld [vmem:[%s7902_s1 + $0x338] sm:$0xff]  }
  0x4d   :  { %5503 = vmatpush3.bf16.msra.mxu1 %v6064_v33  ;;  %v6113_v33 = vld [vmem:[%s7902_s1 + $0x378] sm:$0xff]  }
  0x4e   :  { %5504 = vmatprep.subr.bf16.mxu1 %v6067_v37  ;;  %v6117_v37 = vld [vmem:[%s7902_s1 + $0x3b8] sm:$0xff]  }
  0x4f   :  { %5483 = vmatpush3.bf16.msra.mxu0 %v6066_v36  ;;  %v6115_v36 = vld [vmem:[%s7902_s1 + $0x3f8] sm:$0xff]  }
  0x50   :  { %5484 = vmatprep.subr.bf16.mxu0 %v6069_v39  ;;  %v6118_v39 = vld [vmem:[%s7902_s1 + $0x440] sm:$0xff]  }
  0x51   :  { %5505 = vmatpush3.bf16.msra.mxu1 %v6068_v38  ;;  %v926_v38 = vrot.slane %v6813_v62, %v6584_v34  ;;  %v6140_v62 = vld [vmem:[%s7902_s1 + $0x4e8] sm:$0xff]  }
  0x52   :  { %5506 = vmatprep.subr.bf16.mxu1 %v6071_v41  ;;  %v6120_v41 = vld [vmem:[%s7902_s1 + $0x4c0] sm:$0xff]  }
  0x53   :  { %5485 = vmatpush3.bf16.msra.mxu0 %v6070_v40  ;;  %v6119_v40 = vld [vmem:[%s7902_s1 + $0x400] sm:$0xff]  }
  0x54   :  { %5486 = vmatprep.subr.bf16.mxu0 %v6073_v43  ;;  %v942_v43 = vcombine.high %v926_v38, %v926_v38 }
  0x55   :  { %5507 = vmatpush3.bf16.msra.mxu1 %v6072_v42  ;;  %v6121_v42 = vld [vmem:[%s7902_s1 + $0x480] sm:$0xff]  }
  0x56   :  { %5508 = vmatprep.subr.bf16.mxu1 %v6075_v45  ;;  %v6123_v45 = vld [vmem:[%s7902_s1 + $0x408] sm:$0xff]  }
  0x57   :  { %5487 = vmatpush3.bf16.msra.mxu0 %v6074_v44  ;;  %v6122_v44 = vld [vmem:[%s7902_s1 + $0x448] sm:$0xff]  }
  0x58   :  { %5488 = vmatprep.subr.bf16.mxu0 %v6077_v47  ;;  %v6125_v47 = vld [vmem:[%s7902_s1 + $0x488] sm:$0xff]  }
  0x59   :  { %5509 = vmatpush3.bf16.msra.mxu1 %v6076_v46  ;;  %v6124_v46 = vld [vmem:[%s7902_s1 + $0x4c8] sm:$0xff]  }
  0x5a   :  { %5510 = vmatprep.subr.bf16.mxu1 %v6079_v49  ;;  %v6127_v49 = vld [vmem:[%s7902_s1 + $0x410] sm:$0xff]  }
  0x5b   :  { %5489 = vmatpush3.bf16.msra.mxu0 %v6078_v48  ;;  %v6126_v48 = vld [vmem:[%s7902_s1 + $0x450] sm:$0xff]  }
  0x5c   :  { %5490 = vmatprep.subr.bf16.mxu0 %v6081_v51  ;;  %v6129_v51 = vld [vmem:[%s7902_s1 + $0x490] sm:$0xff]  }
  0x5d   :  { %5511 = vmatpush3.bf16.msra.mxu1 %v6080_v50  ;;  %v6128_v50 = vld [vmem:[%s7902_s1 + $0x4d0] sm:$0xff]  }
  0x5e   :  { %5512 = vmatprep.subr.bf16.mxu1 %v6083_v53  ;;  %v6131_v53 = vld [vmem:[%s7902_s1 + $0x418] sm:$0xff]  }
  0x5f   :  { %5491 = vmatpush3.bf16.msra.mxu0 %v6082_v52  ;;  %v6130_v52 = vld [vmem:[%s7902_s1 + $0x458] sm:$0xff]  }
  0x60   :  { %5520 = vmatprep.subr.bf16.mxu0 %v6085_v58  ;;  %v6136_v58 = vld [vmem:[%s7902_s1 + $0x4e0] sm:$0xff]  }
  0x61   :  { %5513 = vmatpush3.bf16.msra.mxu1 %v6084_v56  ;;  %v6134_v56 = vld [vmem:[%s7902_s1 + $0x460] sm:$0xff]  }
  0x62   :  { %3749 = vmatmul.mubr.bf16.vlgmr.msra.gmra.mrb[8].mxu0 %v919_v60  ;;  %5542 = vmatprep.subr.bf16.mxu1 %v6087_v63  ;;  %v6138_v60 = vld [vmem:[%s7902_s1 + $0x468] sm:$0xff]  }
  0x63   :  { %5521 = vmatpush3.bf16.msra.mxu0 %v6086_v61  ;;  %3828 = vmatprep.mubr.bf16.mxu0 %v940_v7  ;;  %v6139_v61 = vld [vmem:[%s7902_s1 + $0x428] sm:$0xff]   ;;  %v44_v7 = vld [vmem:[%s7903_s0 + $0x10] sm:$0xff] }
  0x64   :  { %3789 = vmatmul.mubr.bf16.vlgmr.msra.gmra.mrb[8].mxu1 %v941_v3  ;;  %5522 = vmatprep.subr.bf16.mxu0 %v6089_v4  ;;  %v6141_v63 = vld [vmem:[%s7902_s1 + $0x4a8] sm:$0xff]   ;;  %v6145_v3 = vld [vmem:[%s7902_s1 + $0x4b0] sm:$0xff]   ;;  %v6146_v4 = vld [vmem:[%s7902_s1 + $0x478] sm:$0xff]  }
  0x65   :  { %5543 = vmatpush3.bf16.msra.mxu1 %v6088_v1  ;;  %3868 = vmatprep.mubr.bf16.mxu1 %v944_v10  ;;  %v6143_v1 = vld [vmem:[%s7902_s1 + $0x430] sm:$0xff]   ;;  %v945_v10 = vcombine.high %v44_v7, %v44_v7 }
  0x66   :  { %5544 = vmatprep.subr.bf16.mxu1 %v6091_v8  ;;  %v952_v8 = vrot.slane %v44_v7, %v6584_v34  ;;  %v6197_v7 = vld [vmem:[%s7902_s1 + $0x6d8] sm:$0xff]  }
  0x67   :  { %5523 = vmatpush3.bf16.msra.mxu0 %v6090_v6  ;;  %v6148_v6 = vld [vmem:[%s7902_s1 + $0x4f8] sm:$0xff]  }
  0x68   :  { %5524 = vmatprep.subr.bf16.mxu0 %v6093_v11  ;;  %v6150_v11 = vld [vmem:[%s7902_s1 + $0x540] sm:$0xff]  }
  0x69   :  { %5545 = vmatpush3.bf16.msra.mxu1 %v6092_v9  ;;  %v6149_v9 = vld [vmem:[%s7902_s1 + $0x4b8] sm:$0xff]  }
  0x6a   :  { %5546 = vmatprep.subr.bf16.mxu1 %v6095_v13  ;;  %v968_v13 = vrot.slane %v952_v8, %v6584_v34 }
  0x6b   :  { %5525 = vmatpush3.bf16.msra.mxu0 %v6094_v12  ;;  %v960_v12 = vcombine.high %v952_v8, %v952_v8  ;;  %v6198_v8 = vld [vmem:[%s7902_s1 + $0x698] sm:$0xff]  }
  0x6c   :  { %5526 = vmatprep.subr.bf16.mxu0 %v6097_v15  ;;  %v7019_v15 = vrot.slane %v945_v10, %v6584_v34  ;;  %v6200_v10 = vld [vmem:[%s7902_s1 + $0x620] sm:$0xff]  }
  0x6d   :  { %5547 = vmatpush3.bf16.msra.mxu1 %v6096_v14  ;;  %v6151_v14 = vld [vmem:[%s7902_s1 + $0x500] sm:$0xff]  }
  0x6e   :  { %5548 = vmatprep.subr.bf16.mxu1 %v6099_v17  ;;  %v982_v17 = vrot.slane %v960_v12, %v6584_v34  ;;  %v6202_v12 = vld [vmem:[%s7902_s1 + $0x6a0] sm:$0xff]  }
  0x6f   :  { %5527 = vmatpush3.bf16.msra.mxu0 %v6098_v16  ;;  %v6152_v16 = vld [vmem:[%s7902_s1 + $0x5c0] sm:$0xff]  }
  0x70   :  { %5528 = vmatprep.subr.bf16.mxu0 %v6101_v19  ;;  %v961_v19 = vcombine.high %v7019_v15, %v7019_v15 }
  0x71   :  { %5549 = vmatpush3.bf16.msra.mxu1 %v6100_v18  ;;  %v6153_v18 = vld [vmem:[%s7902_s1 + $0x580] sm:$0xff]  }
  0x72   :  { %5550 = vmatprep.subr.bf16.mxu1 %v6103_v21  ;;  %v6154_v21 = vld [vmem:[%s7902_s1 + $0x548] sm:$0xff]  }
  0x73   :  { %5529 = vmatpush3.bf16.msra.mxu0 %v6102_v20  ;;  %v990_v20 = vcombine.high %v968_v13, %v968_v13 }
  0x74   :  { %5530 = vmatprep.subr.bf16.mxu0 %v6105_v24  ;;  %v6155_v24 = vld [vmem:[%s7902_s1 + $0x508] sm:$0xff]  }
  0x75   :  { %5551 = vmatpush3.bf16.msra.mxu1 %v6104_v22  ;;  %v992_v22 = vcombine.high %v982_v17, %v982_v17 }
  0x76   :  { %5552 = vmatprep.subr.bf16.mxu1 %v6107_v26  ;;  %v6156_v26 = vld [vmem:[%s7902_s1 + $0x5c8] sm:$0xff]  }
  0x77   :  { %5531 = vmatpush3.bf16.msra.mxu0 %v6106_v25  ;;  %v989_v25 = vrot.slane %v961_v19, %v6584_v34  ;;  %v6209_v19 = vld [vmem:[%s7902_s1 + $0x6f0] sm:$0xff]  }
  0x78   :  { %5532 = vmatprep.subr.bf16.mxu0 %v6109_v28 }
  0x79   :  { %5553 = vmatpush3.bf16.msra.mxu1 %v6108_v27  ;;  %v6157_v27 = vld [vmem:[%s7902_s1 + $0x588] sm:$0xff]   ;;  %v993_v28 = vcombine.high %v989_v25, %v989_v25 }
  0x7a   :  { %5554 = vmatprep.subr.bf16.mxu1 %v6111_v31  ;;  %v6159_v31 = vld [vmem:[%s7902_s1 + $0x510] sm:$0xff]  }
  0x7b   :  { %5533 = vmatpush3.bf16.msra.mxu0 %v6110_v30  ;;  %v6158_v30 = vld [vmem:[%s7902_s1 + $0x550] sm:$0xff]  }
  0x7c   :  { %5534 = vmatprep.subr.bf16.mxu0 %v6113_v33  ;;  %v6161_v33 = vld [vmem:[%s7902_s1 + $0x590] sm:$0xff]  }
  0x7d   :  { %5555 = vmatpush3.bf16.msra.mxu1 %v6112_v32  ;;  %v6160_v32 = vld [vmem:[%s7902_s1 + $0x5d0] sm:$0xff]  }
  0x7e   :  { %5556 = vmatprep.subr.bf16.mxu1 %v6115_v36  ;;  %v6163_v36 = vld [vmem:[%s7902_s1 + $0x518] sm:$0xff]  }
  0x7f   :  { %5535 = vmatpush3.bf16.msra.mxu0 %v6114_v35  ;;  %v6162_v35 = vld [vmem:[%s7902_s1 + $0x558] sm:$0xff]  }
  0x80   :  { %5564 = vmatprep.subr.bf16.mxu0 %v6118_v39  ;;  %v6166_v39 = vld [vmem:[%s7902_s1 + $0x560] sm:$0xff]  }
  0x81   :  { %5557 = vmatpush3.bf16.msra.mxu1 %v6117_v37  ;;  %v6164_v37 = vld [vmem:[%s7902_s1 + $0x5d8] sm:$0xff]  }
  0x82   :  { %3829 = vmatmul.mubr.bf16.vlgmr.msra.gmra.mrb[12].mxu0 %v926_v38  ;;  %5586 = vmatprep.subr.bf16.mxu1 %v6120_v41  ;;  %v6165_v38 = vld [vmem:[%s7902_s1 + $0x598] sm:$0xff]   ;;  %v6168_v41 = vld [vmem:[%s7902_s1 + $0x5e0] sm:$0xff]  }
  0x83   :  { %5565 = vmatpush3.bf16.msra.mxu0 %v6119_v40  ;;  %3908 = vmatprep.mubr.bf16.mxu0 %v982_v17  ;;  %v6167_v40 = vld [vmem:[%s7902_s1 + $0x520] sm:$0xff]   ;;  %v6207_v17 = vld [vmem:[%s7902_s1 + $0x670] sm:$0xff]  }
  0x84   :  { %3869 = vmatmul.mubr.bf16.vlgmr.msra.gmra.mrb[12].mxu1 %v942_v43  ;;  %5566 = vmatprep.subr.bf16.mxu0 %v6122_v44  ;;  %v6170_v43 = vld [vmem:[%s7902_s1 + $0x568] sm:$0xff]  }
  0x85   :  { %5587 = vmatpush3.bf16.msra.mxu1 %v6121_v42  ;;  %3948 = vmatprep.mubr.bf16.mxu1 %v992_v22  ;;  %v6169_v42 = vld [vmem:[%s7902_s1 + $0x5a0] sm:$0xff]   ;;  %v6171_v44 = vld [vmem:[%s7902_s1 + $0x528] sm:$0xff]   ;;  %v6212_v22 = vld [vmem:[%s7902_s1 + $0x638] sm:$0xff]  }
  0x86   :  { %5588 = vmatprep.subr.bf16.mxu1 %v6124_v46  ;;  %v6173_v46 = vld [vmem:[%s7902_s1 + $0x5a8] sm:$0xff]  }
  0x87   :  { %5567 = vmatpush3.bf16.msra.mxu0 %v6123_v45  ;;  %v6172_v45 = vld [vmem:[%s7902_s1 + $0x5e8] sm:$0xff]  }
  0x88   :  { %5568 = vmatprep.subr.bf16.mxu0 %v6126_v48  ;;  %v6175_v48 = vld [vmem:[%s7902_s1 + $0x530] sm:$0xff]  }
  0x89   :  { %5589 = vmatpush3.bf16.msra.mxu1 %v6125_v47  ;;  %v6174_v47 = vld [vmem:[%s7902_s1 + $0x570] sm:$0xff]  }
  0x8a   :  { %5590 = vmatprep.subr.bf16.mxu1 %v6128_v50  ;;  %v6177_v50 = vld [vmem:[%s7902_s1 + $0x5b0] sm:$0xff]  }
  0x8b   :  { %5569 = vmatpush3.bf16.msra.mxu0 %v6127_v49  ;;  %v6176_v49 = vld [vmem:[%s7902_s1 + $0x5f0] sm:$0xff]  }
  0x8c   :  { %5570 = vmatprep.subr.bf16.mxu0 %v6130_v52  ;;  %v6179_v52 = vld [vmem:[%s7902_s1 + $0x538] sm:$0xff]  }
  0x8d   :  { %5591 = vmatpush3.bf16.msra.mxu1 %v6129_v51  ;;  %v6178_v51 = vld [vmem:[%s7902_s1 + $0x578] sm:$0xff]  }
  0x8e   :  { %5592 = vmatprep.subr.bf16.mxu1 %v6132_v54  ;;  %v6182_v54 = vld [vmem:[%s7902_s1 + $0x5b8] sm:$0xff]  }
  0x8f   :  { %5571 = vmatpush3.bf16.msra.mxu0 %v6131_v53  ;;  %v6180_v53 = vld [vmem:[%s7902_s1 + $0x5f8] sm:$0xff]  }
  0x90   :  { %5572 = vmatprep.subr.bf16.mxu0 %v6134_v56  ;;  %v6183_v56 = vld [vmem:[%s7902_s1 + $0x640] sm:$0xff]  }
  0x91   :  { %5593 = vmatpush3.bf16.msra.mxu1 %v6133_v55  ;;  %v975_v55 = vrot.slane %v7019_v15, %v6584_v34  ;;  %v6205_v15 = vld [vmem:[%s7902_s1 + $0x6e8] sm:$0xff]  }
  0x92   :  { %5594 = vmatprep.subr.bf16.mxu1 %v6136_v58  ;;  %v6185_v58 = vld [vmem:[%s7902_s1 + $0x6c0] sm:$0xff]  }
  0x93   :  { %5573 = vmatpush3.bf16.msra.mxu0 %v6135_v57  ;;  %v6184_v57 = vld [vmem:[%s7902_s1 + $0x600] sm:$0xff]  }
  0x94   :  { %5574 = vmatprep.subr.bf16.mxu0 %v6138_v60  ;;  %v991_v60 = vcombine.high %v975_v55, %v975_v55 }
  0x95   :  { %5595 = vmatpush3.bf16.msra.mxu1 %v6137_v59  ;;  %v6186_v59 = vld [vmem:[%s7902_s1 + $0x680] sm:$0xff]  }
  0x96   :  { %5596 = vmatprep.subr.bf16.mxu1 %v6140_v62  ;;  %v6188_v62 = vld [vmem:[%s7902_s1 + $0x608] sm:$0xff]  }
  0x97   :  { %5575 = vmatpush3.bf16.msra.mxu0 %v6139_v61  ;;  %v6187_v61 = vld [vmem:[%s7902_s1 + $0x648] sm:$0xff]  }
  0x98   :  { %5576 = vmatprep.subr.bf16.mxu0 %v6142_v0  ;;  %v6190_v0 = vld [vmem:[%s7902_s1 + $0x688] sm:$0xff]  }
  0x99   :  { %5597 = vmatpush3.bf16.msra.mxu1 %v6141_v63  ;;  %v6189_v63 = vld [vmem:[%s7902_s1 + $0x6c8] sm:$0xff]  }
  0x9a   :  { %5598 = vmatprep.subr.bf16.mxu1 %v6144_v2  ;;  %v6192_v2 = vld [vmem:[%s7902_s1 + $0x610] sm:$0xff]  }
  0x9b   :  { %5577 = vmatpush3.bf16.msra.mxu0 %v6143_v1  ;;  %v6191_v1 = vld [vmem:[%s7902_s1 + $0x650] sm:$0xff]  }
  0x9c   :  { %5578 = vmatprep.subr.bf16.mxu0 %v6146_v4  ;;  %v6194_v4 = vld [vmem:[%s7902_s1 + $0x690] sm:$0xff]  }
  0x9d   :  { %5599 = vmatpush3.bf16.msra.mxu1 %v6145_v3  ;;  %v6193_v3 = vld [vmem:[%s7902_s1 + $0x6d0] sm:$0xff]  }
  0x9e   :  { %5600 = vmatprep.subr.bf16.mxu1 %v6148_v6  ;;  %v6196_v6 = vld [vmem:[%s7902_s1 + $0x618] sm:$0xff]  }
  0x9f   :  { %5579 = vmatpush3.bf16.msra.mxu0 %v6147_v5  ;;  %v6195_v5 = vld [vmem:[%s7902_s1 + $0x658] sm:$0xff]  }
  0xa0   :  { %5608 = vmatprep.subr.bf16.mxu0 %v6150_v11  ;;  %v6201_v11 = vld [vmem:[%s7902_s1 + $0x6e0] sm:$0xff]  }
  0xa1   :  { %5601 = vmatpush3.bf16.msra.mxu1 %v6149_v9  ;;  %v6199_v9 = vld [vmem:[%s7902_s1 + $0x660] sm:$0xff]  }
  0xa2   :  { %3909 = vmatmul.mubr.bf16.vlgmr.msra.gmra.mrb[16].mxu0 %v968_v13  ;;  %5630 = vmatprep.subr.bf16.mxu1 %v6152_v16  ;;  %v6203_v13 = vld [vmem:[%s7902_s1 + $0x668] sm:$0xff]  }
  0xa3   :  { %5609 = vmatpush3.bf16.msra.mxu0 %v6151_v14  ;;  %3988 = vmatprep.mubr.bf16.mxu0 %v989_v25  ;;  %v6204_v14 = vld [vmem:[%s7902_s1 + $0x628] sm:$0xff]   ;;  %v45_v25 = vld [vmem:[%s7903_s0 + $0x18] sm:$0xff] }
  0xa4   :  { %3949 = vmatmul.mubr.bf16.vlgmr.msra.gmra.mrb[16].mxu1 %v990_v20  ;;  %5610 = vmatprep.subr.bf16.mxu0 %v6154_v21  ;;  %v6206_v16 = vld [vmem:[%s7902_s1 + $0x6a8] sm:$0xff]   ;;  %v6210_v20 = vld [vmem:[%s7902_s1 + $0x6b0] sm:$0xff]   ;;  %v6211_v21 = vld [vmem:[%s7902_s1 + $0x678] sm:$0xff]  }
  0xa5   :  { %5631 = vmatpush3.bf16.msra.mxu1 %v6153_v18  ;;  %4028 = vmatprep.mubr.bf16.mxu1 %v993_v28  ;;  %v6208_v18 = vld [vmem:[%s7902_s1 + $0x630] sm:$0xff]   ;;  %v994_v28 = vcombine.high %v45_v25, %v45_v25 }
  0xa6   :  { %5632 = vmatprep.subr.bf16.mxu1 %v6156_v26  ;;  %v1001_v26 = vrot.slane %v45_v25, %v6584_v34  ;;  %v6250_v25 = vld [vmem:[%s7902_s1 + $0x8c0] sm:$0xff]  }
  0xa7   :  { %5611 = vmatpush3.bf16.msra.mxu0 %v6155_v24  ;;  %v6213_v24 = vld [vmem:[%s7902_s1 + $0x6f8] sm:$0xff]  }
  0xa8   :  { %5612 = vmatprep.subr.bf16.mxu0 %v6158_v30  ;;  %v6215_v30 = vld [vmem:[%s7902_s1 + $0x740] sm:$0xff]  }
  0xa9   :  { %5633 = vmatpush3.bf16.msra.mxu1 %v6157_v27  ;;  %v6214_v27 = vld [vmem:[%s7902_s1 + $0x6b8] sm:$0xff]  }
  0xaa   :  { %5634 = vmatprep.subr.bf16.mxu1 %v6160_v32  ;;  %v1017_v32 = vrot.slane %v1001_v26, %v6584_v34 }
  0xab   :  { %5613 = vmatpush3.bf16.msra.mxu0 %v6159_v31  ;;  %v1009_v31 = vcombine.high %v1001_v26, %v1001_v26  ;;  %v6251_v26 = vld [vmem:[%s7902_s1 + $0x880] sm:$0xff]  }
  0xac   :  { %5614 = vmatprep.subr.bf16.mxu0 %v6162_v35  ;;  %v6217_v35 = vld [vmem:[%s7902_s1 + $0x7c0] sm:$0xff]  }
  0xad   :  { %5635 = vmatpush3.bf16.msra.mxu1 %v6161_v33  ;;  %v7222_v33 = vrot.slane %v994_v28, %v6584_v34  ;;  %v6252_v28 = vld [vmem:[%s7902_s1 + $0x848] sm:$0xff]  }
  0xae   :  { %5636 = vmatprep.subr.bf16.mxu1 %v6164_v37  ;;  %v6216_v37 = vld [vmem:[%s7902_s1 + $0x700] sm:$0xff]  }
  0xaf   :  { %5615 = vmatpush3.bf16.msra.mxu0 %v6163_v36  ;;  %v1031_v36 = vrot.slane %v1009_v31, %v6584_v34  ;;  %v6254_v31 = vld [vmem:[%s7902_s1 + $0x8c8] sm:$0xff]  }
  0xb0   :  { %5616 = vmatprep.subr.bf16.mxu0 %v6166_v39  ;;  %v1039_v39 = vcombine.high %v1017_v32, %v1017_v32 }
  0xb1   :  { %5637 = vmatpush3.bf16.msra.mxu1 %v6165_v38  ;;  %v1010_v38 = vcombine.high %v7222_v33, %v7222_v33 }
  0xb2   :  { %5638 = vmatprep.subr.bf16.mxu1 %v6168_v41  ;;  %v1041_v41 = vcombine.high %v1031_v36, %v1031_v36 }
  0xb3   :  { %5617 = vmatpush3.bf16.msra.mxu0 %v6167_v40  ;;  %v6219_v40 = vld [vmem:[%s7902_s1 + $0x748] sm:$0xff]  }
  0xb4   :  { %5618 = vmatprep.subr.bf16.mxu0 %v6170_v43  ;;  %v1038_v43 = vrot.slane %v1010_v38, %v6584_v34  ;;  %v6260_v38 = vld [vmem:[%s7902_s1 + $0x858] sm:$0xff]  }
  0xb5   :  { %5639 = vmatpush3.bf16.msra.mxu1 %v6169_v42  ;;  %v6218_v42 = vld [vmem:[%s7902_s1 + $0x780] sm:$0xff]  }
  0xb6   :  { %5640 = vmatprep.subr.bf16.mxu1 %v6172_v45  ;;  %v6220_v45 = vld [vmem:[%s7902_s1 + $0x708] sm:$0xff]  }
  0xb7   :  { %5619 = vmatpush3.bf16.msra.mxu0 %v6171_v44  ;;  %v6221_v44 = vld [vmem:[%s7902_s1 + $0x7c8] sm:$0xff]  }
  0xb8   :  { %5620 = vmatprep.subr.bf16.mxu0 %v6174_v47  ;;  %v6223_v47 = vld [vmem:[%s7902_s1 + $0x750] sm:$0xff]  }
  0xb9   :  { %5641 = vmatpush3.bf16.msra.mxu1 %v6173_v46  ;;  %v1042_v46 = vcombine.high %v1038_v43, %v1038_v43 }
  0xba   :  { %5642 = vmatprep.subr.bf16.mxu1 %v6176_v49  ;;  %v6225_v49 = vld [vmem:[%s7902_s1 + $0x7d0] sm:$0xff]  }
  0xbb   :  { %5621 = vmatpush3.bf16.msra.mxu0 %v6175_v48  ;;  %v6222_v48 = vld [vmem:[%s7902_s1 + $0x788] sm:$0xff]  }
  0xbc   :  { %5622 = vmatprep.subr.bf16.mxu0 %v6178_v51  ;;  %v6227_v51 = vld [vmem:[%s7902_s1 + $0x758] sm:$0xff]  }
  0xbd   :  { %5643 = vmatpush3.bf16.msra.mxu1 %v6177_v50  ;;  %v6224_v50 = vld [vmem:[%s7902_s1 + $0x710] sm:$0xff]  }
  0xbe   :  { %5644 = vmatprep.subr.bf16.mxu1 %v6180_v53  ;;  %v6229_v53 = vld [vmem:[%s7902_s1 + $0x7d8] sm:$0xff]  }
  0xbf   :  { %5623 = vmatpush3.bf16.msra.mxu0 %v6179_v52  ;;  %v6226_v52 = vld [vmem:[%s7902_s1 + $0x790] sm:$0xff]  }
  0xc0   :  { %5652 = vmatprep.subr.bf16.mxu0 %v6183_v56  ;;  %v6230_v56 = vld [vmem:[%s7902_s1 + $0x798] sm:$0xff]  }
  0xc1   :  { %5645 = vmatpush3.bf16.msra.mxu1 %v6182_v54  ;;  %v6228_v54 = vld [vmem:[%s7902_s1 + $0x718] sm:$0xff]  }
  0xc2   :  { %3989 = vmatmul.mubr.bf16.vlgmr.msra.gmra.mrb[20].mxu0 %v975_v55  ;;  %5674 = vmatprep.subr.bf16.mxu1 %v6185_v58  ;;  %v6231_v55 = vld [vmem:[%s7902_s1 + $0x760] sm:$0xff]  }
  0xc3   :  { %5653 = vmatpush3.bf16.msra.mxu0 %v6184_v57  ;;  %4068 = vmatprep.mubr.bf16.mxu0 %v1031_v36  ;;  %v6233_v57 = vld [vmem:[%s7902_s1 + $0x7e0] sm:$0xff]   ;;  %v6258_v36 = vld [vmem:[%s7902_s1 + $0x8d0] sm:$0xff]  }
  0xc4   :  { %4029 = vmatmul.mubr.bf16.vlgmr.msra.gmra.mrb[20].mxu1 %v991_v60  ;;  %5654 = vmatprep.subr.bf16.mxu0 %v6187_v61  ;;  %v6232_v58 = vld [vmem:[%s7902_s1 + $0x720] sm:$0xff]   ;;  %v6237_v61 = vld [vmem:[%s7902_s1 + $0x7e8] sm:$0xff]  }
  0xc5   :  { %5675 = vmatpush3.bf16.msra.mxu1 %v6186_v59  ;;  %4108 = vmatprep.mubr.bf16.mxu1 %v1041_v41  ;;  %v6235_v59 = vld [vmem:[%s7902_s1 + $0x768] sm:$0xff]   ;;  %v6234_v60 = vld [vmem:[%s7902_s1 + $0x7a0] sm:$0xff]   ;;  %v6263_v41 = vld [vmem:[%s7902_s1 + $0x898] sm:$0xff]  }
  0xc6   :  { %5676 = vmatprep.subr.bf16.mxu1 %v6189_v63  ;;  %v6236_v63 = vld [vmem:[%s7902_s1 + $0x728] sm:$0xff]  }
  0xc7   :  { %5655 = vmatpush3.bf16.msra.mxu0 %v6188_v62  ;;  %v4960_v62 = vld [vmem:[%s7904_s2] ss:$0 sm:$0xff] }
  0xc8   :  { %5656 = vmatprep.subr.bf16.mxu0 %v6191_v1  ;;  %v6239_v1 = vld [vmem:[%s7902_s1 + $0x770] sm:$0xff]  }
  0xc9   :  { %5677 = vmatpush3.bf16.msra.mxu1 %v6190_v0 }
  0xca   :  { %5678 = vmatprep.subr.bf16.mxu1 %v6193_v3  ;;  %v6238_v3 = vld [vmem:[%s7902_s1 + $0x7a8] sm:$0xff]  }
  0xcb   :  { %5657 = vmatpush3.bf16.msra.mxu0 %v6192_v2 }
  0xcc   :  { %5658 = vmatprep.subr.bf16.mxu0 %v6195_v5 }
  0xcd   :  { %5679 = vmatpush3.bf16.msra.mxu1 %v6194_v4 }
  0xce   :  { %5680 = vmatprep.subr.bf16.mxu1 %v6197_v7  ;;  %v6240_v7 = vld [vmem:[%s7902_s1 + $0x730] sm:$0xff]  }
  0xcf   :  { %5659 = vmatpush3.bf16.msra.mxu0 %v6196_v6 }
  0xd0   :  { %5660 = vmatprep.subr.bf16.mxu0 %v6199_v9 }
  0xd1   :  { %5681 = vmatpush3.bf16.msra.mxu1 %v6198_v8  ;;  %v6241_v8 = vld [vmem:[%s7902_s1 + $0x7f0] sm:$0xff]  }
  0xd2   :  { %5682 = vmatprep.subr.bf16.mxu1 %v6201_v11  ;;  %v6242_v11 = vld [vmem:[%s7902_s1 + $0x7b0] sm:$0xff]  }
  0xd3   :  { %5661 = vmatpush3.bf16.msra.mxu0 %v6200_v10 }
  0xd4   :  { %5662 = vmatprep.subr.bf16.mxu0 %v6203_v13 }
  0xd5   :  { %5683 = vmatpush3.bf16.msra.mxu1 %v6202_v12 }
  0xd6   :  { %5684 = vmatprep.subr.bf16.mxu1 %v6205_v15 }
  0xd7   :  { %5663 = vmatpush3.bf16.msra.mxu0 %v6204_v14  ;;  %v6243_v14 = vld [vmem:[%s7902_s1 + $0x778] sm:$0xff]  }
  0xd8   :  { %5664 = vmatprep.subr.bf16.mxu0 %v6207_v17 }
  0xd9   :  { %5685 = vmatpush3.bf16.msra.mxu1 %v6206_v16  ;;  %v6244_v16 = vld [vmem:[%s7902_s1 + $0x738] sm:$0xff]  }
  0xda   :  { %5686 = vmatprep.subr.bf16.mxu1 %v6209_v19  ;;  %v6245_v19 = vld [vmem:[%s7902_s1 + $0x7f8] sm:$0xff]  }
  0xdb   :  { %5665 = vmatpush3.bf16.msra.mxu0 %v6208_v18 }
  0xdc   :  { %5666 = vmatprep.subr.bf16.mxu0 %v6211_v21  ;;  %v1024_v21 = vrot.slane %v7222_v33, %v6584_v34  ;;  %v6256_v33 = vld [vmem:[%s7902_s1 + $0x850] sm:$0xff]  }
  0xdd   :  { %5687 = vmatpush3.bf16.msra.mxu1 %v6210_v20  ;;  %v6247_v20 = vld [vmem:[%s7902_s1 + $0x7b8] sm:$0xff]  }
  0xde   :  { %5688 = vmatprep.subr.bf16.mxu1 %v6213_v24  ;;  %v6249_v24 = vld [vmem:[%s7902_s1 + $0x800] sm:$0xff]  }
  0xdf   :  { %5667 = vmatpush3.bf16.msra.mxu0 %v6212_v22  ;;  %v6248_v22 = vld [vmem:[%s7902_s1 + $0x840] sm:$0xff]  }
  0xe0   :  { %5696 = vmatprep.subr.bf16.mxu0 %v6215_v30  ;;  %v6253_v30 = vld [vmem:[%s7902_s1 + $0x808] sm:$0xff]  }
  0xe1   :  { %5689 = vmatpush3.bf16.msra.mxu1 %v6214_v27  ;;  %v1040_v27 = vcombine.high %v1024_v21, %v1024_v21 }
  0xe2   :  { %5718 = vmatprep.subr.bf16.mxu1 %v6217_v35  ;;  %4069 = vmatmul.mubr.bf16.vlgmr.msra.gmra.mrb[24].mxu0 %v1017_v32  ;;  %v6255_v32 = vld [vmem:[%s7902_s1 + $0x888] sm:$0xff]   ;;  %v6257_v35 = vld [vmem:[%s7902_s1 + $0x810] sm:$0xff]  }
  0xe3   :  { %5697 = vmatpush3.bf16.msra.mxu0 %v6216_v37  ;;  %4148 = vmatprep.mubr.bf16.mxu0 %v1038_v43  ;;  %v6259_v37 = vld [vmem:[%s7902_s1 + $0x890] sm:$0xff]   ;;  %v6265_v43 = vld [vmem:[%s7902_s1 + $0x820] sm:$0xff]  }
  0xe4   :  { %4109 = vmatmul.mubr.bf16.vlgmr.msra.gmra.mrb[24].mxu1 %v1039_v39  ;;  %5698 = vmatprep.subr.bf16.mxu0 %v6219_v40  ;;  %v6261_v39 = vld [vmem:[%s7902_s1 + $0x818] sm:$0xff]  }
  0xe5   :  { %5719 = vmatpush3.bf16.msra.mxu1 %v6218_v42  ;;  %4188 = vmatprep.mubr.bf16.mxu1 %v1042_v46  ;;  %v6262_v40 = vld [vmem:[%s7902_s1 + $0x8d8] sm:$0xff]   ;;  %v6264_v42 = vld [vmem:[%s7902_s1 + $0x860] sm:$0xff]   ;;  %v6268_v46 = vld [vmem:[%s7902_s1 + $0x868] sm:$0xff]  }
  0xe6   :  { %5720 = vmatprep.subr.bf16.mxu1 %v6221_v44  ;;  %v6266_v44 = vld [vmem:[%s7902_s1 + $0x8e0] sm:$0xff]  }
  0xe7   :  { %5699 = vmatpush3.bf16.msra.mxu0 %v6220_v45  ;;  %v6267_v45 = vld [vmem:[%s7902_s1 + $0x8a0] sm:$0xff]  }
  0xe8   :  { %5700 = vmatprep.subr.bf16.mxu0 %v6223_v47  ;;  %v6269_v47 = vld [vmem:[%s7902_s1 + $0x828] sm:$0xff]  }
  0xe9   :  { %5721 = vmatpush3.bf16.msra.mxu1 %v6222_v48  ;;  %v6270_v48 = vld [vmem:[%s7902_s1 + $0x8e8] sm:$0xff]  }
  0xea   :  { %5722 = vmatprep.subr.bf16.mxu1 %v6225_v49  ;;  %v6271_v49 = vld [vmem:[%s7902_s1 + $0x8a8] sm:$0xff]  }
  0xeb   :  { %5701 = vmatpush3.bf16.msra.mxu0 %v6224_v50 }
  0xec   :  { %5702 = vmatprep.subr.bf16.mxu0 %v6227_v51  ;;  %v6272_v51 = vld [vmem:[%s7902_s1 + $0x870] sm:$0xff]  }
  0xed   :  { %5723 = vmatpush3.bf16.msra.mxu1 %v6226_v52 }
  0xee   :  { %5724 = vmatprep.subr.bf16.mxu1 %v6229_v53  ;;  %v6273_v53 = vld [vmem:[%s7902_s1 + $0x830] sm:$0xff]  }
  0xef   :  { %5703 = vmatpush3.bf16.msra.mxu0 %v6228_v54 }
  0xf0   :  { %5704 = vmatprep.subr.bf16.mxu0 %v6231_v55 }
  0xf1   :  { %5725 = vmatpush3.bf16.msra.mxu1 %v6230_v56 }
  0xf2   :  { %5726 = vmatprep.subr.bf16.mxu1 %v6233_v57 }
  0xf3   :  { %5705 = vmatpush3.bf16.msra.mxu0 %v6232_v58 }
  0xf4   :  { %5706 = vmatprep.subr.bf16.mxu0 %v6235_v59  ;;  %v6274_v59 = vld [vmem:[%s7902_s1 + $0x8f0] sm:$0xff]  }
  0xf5   :  { %v5404_v0 = vpop.f32.mrb[0].mxu0  ;;  %5727 = vmatpush3.bf16.msra.mxu1 %v6234_v60  ;;  %v6275_v60 = vld [vmem:[%s7902_s1 + $0x8b0] sm:$0xff]  }
  0xf6   :  { %v5405_v2 = vpop.f32.mrb[1].mxu0  ;;  %5728 = vmatprep.subr.bf16.mxu1 %v6237_v61 }
  0xf7   :  { %v5406_v4 = vadd.f32 %v5405_v2, %v5404_v0  ;;  %v5407_v5 = vpop.f32.mrb[2].mxu0  ;;  %v5426_v6 = vpop.f32.mrb[0].mxu1  ;;  %5707 = vmatpush3.bf16.msra.mxu0 %v6236_v63  ;;  %v6276_v63 = vld [vmem:[%s7902_s1 + $0x878] sm:$0xff]  }
  0xf8   :  { %v5408_v9 = vpop.f32.mrb[3].mxu0  ;;  %v5427_v10 = vpop.f32.mrb[1].mxu1  ;;  %5708 = vmatprep.subr.bf16.mxu0 %v6239_v1  ;;  %v6277_v2 = vld [vmem:[%s7902_s1 + $0x838] sm:$0xff]   ;;  %v46_v5 = vld [vmem:[%s7903_s0 + $0x20] sm:$0xff] }
  0xf9   :  { %v3591_v12 = vadd.f32 %v5406_v4, %v4960_v62  ;;  %v5428_v13 = vadd.f32 %v5427_v10, %v5426_v6  ;;  %v5429_v15 = vpop.f32.mrb[2].mxu1  ;;  %5729 = vmatpush3.bf16.msra.mxu1 %v6238_v3  ;;  %v6278_v4 = vld [vmem:[%s7902_s1 + $0x8f8] sm:$0xff]   ;;  %v1050_v6 = vrot.slane %v46_v5, %v6584_v34  ;;  %v6280_v9 = vld [vmem:[%s7902_s1 + $0x940] sm:$0xff]  }
  0xfa   :  { %v5430_v17 = vpop.f32.mrb[3].mxu1  ;;  %5730 = vmatprep.subr.bf16.mxu1 %v6241_v8  ;;  %v1043_v8 = vcombine.high %v46_v5, %v46_v5  ;;  %v6316_v5 = vld [vmem:[%s7902_s1 + $0xa80] sm:$0xff]  }
  0xfb   :  { %v7318_v18 = vadd.f32 %v5428_v13, %v3591_v12  ;;  %5709 = vmatpush3.bf16.msra.mxu0 %v6240_v7  ;;  %v6279_v7 = vld [vmem:[%s7902_s1 + $0x8b8] sm:$0xff]   ;;  %v1058_v10 = vcombine.high %v1050_v6, %v1050_v6  ;;  %v6281_v12 = vld [vmem:[%s7902_s1 + $0x900] sm:$0xff]  }
  0xfc   :  { %5710 = vmatprep.subr.bf16.mxu0 %v6243_v14  ;;  %v7439_v13 = vrot.slane %v1043_v8, %v6584_v34  ;;  %v6282_v14 = vld [vmem:[%s7902_s1 + $0x9c0] sm:$0xff]   ;;  %v6318_v8 = vld [vmem:[%s7902_s1 + $0xa08] sm:$0xff]  }
  0xfd   :  { %5731 = vmatpush3.bf16.msra.mxu1 %v6242_v11  ;;  %v1066_v11 = vrot.slane %v1050_v6, %v6584_v34  ;;  %v1080_v15 = vrot.slane %v1058_v10, %v6584_v34  ;;  %v6320_v10 = vld [vmem:[%s7902_s1 + $0xa88] sm:$0xff]  }
  0xfe   :  { %5732 = vmatprep.subr.bf16.mxu1 %v6245_v19  ;;  %v1059_v17 = vcombine.high %v7439_v13, %v7439_v13  ;;  %v6284_v19 = vld [vmem:[%s7902_s1 + $0x948] sm:$0xff]  }
  0xff   :  { %5711 = vmatpush3.bf16.msra.mxu0 %v6244_v16  ;;  %v6283_v16 = vld [vmem:[%s7902_s1 + $0x980] sm:$0xff]  }
 0x100   :  { %5740 = vmatprep.subr.bf16.mxu0 %v6248_v22  ;;  %v1087_v22 = vrot.slane %v1059_v17, %v6584_v34  ;;  %v6327_v17 = vld [vmem:[%s7902_s1 + $0xad8] sm:$0xff]  }
 0x101   :  { %5733 = vmatpush3.bf16.msra.mxu1 %v6247_v20  ;;  %v1090_v20 = vcombine.high %v1080_v15, %v1080_v15 }
 0x102   :  { %4149 = vmatmul.mubr.bf16.vlgmr.msra.gmra.mrb[28].mxu0 %v1024_v21  ;;  %5762 = vmatprep.subr.bf16.mxu1 %v6250_v25  ;;  %v6285_v21 = vld [vmem:[%s7902_s1 + $0x908] sm:$0xff]  }
 0x103   :  { %5741 = vmatpush3.bf16.msra.mxu0 %v6249_v24  ;;  %4228 = vmatprep.mubr.bf16.mxu0 %v1080_v15  ;;  %v6286_v24 = vld [vmem:[%s7902_s1 + $0x9c8] sm:$0xff]   ;;  %v6325_v15 = vld [vmem:[%s7902_s1 + $0xa58] sm:$0xff]  }
 0x104   :  { %4189 = vmatmul.mubr.bf16.vlgmr.msra.gmra.mrb[28].mxu1 %v1040_v27  ;;  %5742 = vmatprep.subr.bf16.mxu0 %v6252_v28  ;;  %v6287_v25 = vld [vmem:[%s7902_s1 + $0x988] sm:$0xff]   ;;  %v6288_v27 = vld [vmem:[%s7902_s1 + $0x950] sm:$0xff]  }
 0x105   :  { %5763 = vmatpush3.bf16.msra.mxu1 %v6251_v26  ;;  %4268 = vmatprep.mubr.bf16.mxu1 %v1090_v20  ;;  %v1091_v26 = vcombine.high %v1087_v22, %v1087_v22  ;;  %v6289_v28 = vld [vmem:[%s7902_s1 + $0x910] sm:$0xff]   ;;  %v6330_v20 = vld [vmem:[%s7902_s1 + $0xa20] sm:$0xff]  }
 0x106   :  { %5764 = vmatprep.subr.bf16.mxu1 %v6254_v31  ;;  %v6291_v31 = vld [vmem:[%s7902_s1 + $0x990] sm:$0xff]  }
 0x107   :  { %5743 = vmatpush3.bf16.msra.mxu0 %v6253_v30  ;;  %v6290_v30 = vld [vmem:[%s7902_s1 + $0x9d0] sm:$0xff]  }
 0x108   :  { %5744 = vmatprep.subr.bf16.mxu0 %v6256_v33  ;;  %v6293_v33 = vld [vmem:[%s7902_s1 + $0x918] sm:$0xff]  }
 0x109   :  { %5765 = vmatpush3.bf16.msra.mxu1 %v6255_v32  ;;  %v6292_v32 = vld [vmem:[%s7902_s1 + $0x958] sm:$0xff]  }
 0x10a   :  { %5766 = vmatprep.subr.bf16.mxu1 %v6258_v36  ;;  %v6295_v36 = vld [vmem:[%s7902_s1 + $0x998] sm:$0xff]  }
 0x10b   :  { %5745 = vmatpush3.bf16.msra.mxu0 %v6257_v35  ;;  %v6294_v35 = vld [vmem:[%s7902_s1 + $0x9d8] sm:$0xff]  }
 0x10c   :  { %5746 = vmatprep.subr.bf16.mxu0 %v6260_v38  ;;  %v6297_v38 = vld [vmem:[%s7902_s1 + $0x920] sm:$0xff]  }
 0x10d   :  { %5767 = vmatpush3.bf16.msra.mxu1 %v6259_v37  ;;  %v6296_v37 = vld [vmem:[%s7902_s1 + $0x960] sm:$0xff]  }
 0x10e   :  { %5768 = vmatprep.subr.bf16.mxu1 %v6262_v40  ;;  %v6299_v40 = vld [vmem:[%s7902_s1 + $0x9a0] sm:$0xff]  }
 0x10f   :  { %5747 = vmatpush3.bf16.msra.mxu0 %v6261_v39  ;;  %v6298_v39 = vld [vmem:[%s7902_s1 + $0x9e0] sm:$0xff]  }
 0x110   :  { %5748 = vmatprep.subr.bf16.mxu0 %v6264_v42  ;;  %v6301_v42 = vld [vmem:[%s7902_s1 + $0x928] sm:$0xff]  }
 0x111   :  { %5769 = vmatpush3.bf16.msra.mxu1 %v6263_v41  ;;  %v6300_v41 = vld [vmem:[%s7902_s1 + $0x968] sm:$0xff]  }
 0x112   :  { %5770 = vmatprep.subr.bf16.mxu1 %v6266_v44 }
 0x113   :  { %5749 = vmatpush3.bf16.msra.mxu0 %v6265_v43  ;;  %v6302_v43 = vld [vmem:[%s7902_s1 + $0x9e8] sm:$0xff]  }
 0x114   :  { %5750 = vmatprep.subr.bf16.mxu0 %v6268_v46 }
 0x115   :  { %v5448_v50 = vpop.f32.mrb[4].mxu0  ;;  %5771 = vmatpush3.bf16.msra.mxu1 %v6267_v45  ;;  %v6303_v45 = vld [vmem:[%s7902_s1 + $0x9a8] sm:$0xff]  }
 0x116   :  { %v5449_v52 = vpop.f32.mrb[5].mxu0  ;;  %5772 = vmatprep.subr.bf16.mxu1 %v6270_v48 }
 0x117   :  { %v5450_v54 = vadd.f32 %v5449_v52, %v5448_v50  ;;  %v5451_v55 = vpop.f32.mrb[6].mxu0  ;;  %v5470_v56 = vpop.f32.mrb[4].mxu1  ;;  %5751 = vmatpush3.bf16.msra.mxu0 %v6269_v47  ;;  %v6304_v47 = vld [vmem:[%s7902_s1 + $0x970] sm:$0xff]  }
 0x118   :  { %v5452_v57 = vpop.f32.mrb[7].mxu0  ;;  %v5471_v58 = vpop.f32.mrb[5].mxu1  ;;  %5752 = vmatprep.subr.bf16.mxu0 %v6272_v51  ;;  %v6305_v51 = vld [vmem:[%s7902_s1 + $0x930] sm:$0xff]  }
 0x119   :  { %v3671_v61 = vadd.f32 %v5450_v54, %v7318_v18  ;;  %v5472_v62 = vadd.f32 %v5471_v58, %v5470_v56  ;;  %5773 = vmatpush3.bf16.msra.mxu1 %v6271_v49  ;;  %v5473_v0 = vpop.f32.mrb[6].mxu1  ;;  %v1088_v18 = vcombine.high %v1066_v11, %v1066_v11  ;;  %v6306_v52 = vld [vmem:[%s7902_s1 + $0x9f0] sm:$0xff]  }
 0x11a   :  { %5774 = vmatprep.subr.bf16.mxu1 %v6274_v59  ;;  %v5474_v3 = vpop.f32.mrb[7].mxu1  ;;  %v6307_v57 = vld [vmem:[%s7902_s1 + $0x9b0] sm:$0xff]   ;;  %v6308_v59 = vld [vmem:[%s7902_s1 + $0x978] sm:$0xff]  }
 0x11b   :  { %v7416_v1 = vadd.f32 %v5472_v62, %v3671_v61  ;;  %5753 = vmatpush3.bf16.msra.mxu0 %v6273_v53  ;;  %v6309_v62 = vld [vmem:[%s7902_s1 + $0x938] sm:$0xff]   ;;  %v6314_v3 = vld [vmem:[%s7902_s1 + $0xa00] sm:$0xff]  }
 0x11c   :  { %5754 = vmatprep.subr.bf16.mxu0 %v6276_v63  ;;  %v6310_v63 = vld [vmem:[%s7902_s1 + $0x9f8] sm:$0xff]  }
 0x11d   :  { %5775 = vmatpush3.bf16.msra.mxu1 %v6275_v60  ;;  %v6312_v0 = vld [vmem:[%s7902_s1 + $0x9b8] sm:$0xff]  }
 0x11e   :  { %5776 = vmatprep.subr.bf16.mxu1 %v6278_v4  ;;  %v6315_v4 = vld [vmem:[%s7902_s1 + $0xac0] sm:$0xff]  }
 0x11f   :  { %5755 = vmatpush3.bf16.msra.mxu0 %v6277_v2  ;;  %v6313_v2 = vld [vmem:[%s7902_s1 + $0xa40] sm:$0xff]  }
 0x120   :  { %5784 = vmatprep.subr.bf16.mxu0 %v6280_v9  ;;  %v6319_v9 = vld [vmem:[%s7902_s1 + $0xac8] sm:$0xff]  }
 0x121   :  { %5777 = vmatpush3.bf16.msra.mxu1 %v6279_v7  ;;  %v6317_v7 = vld [vmem:[%s7902_s1 + $0xa48] sm:$0xff]  }
 0x122   :  { %5806 = vmatprep.subr.bf16.mxu1 %v6282_v14  ;;  %4229 = vmatmul.mubr.bf16.vlgmr.msra.gmra.mrb[32].mxu0 %v1066_v11  ;;  %v6321_v11 = vld [vmem:[%s7902_s1 + $0xa50] sm:$0xff]  }
 0x123   :  { %5785 = vmatpush3.bf16.msra.mxu0 %v6281_v12  ;;  %4308 = vmatprep.mubr.bf16.mxu0 %v1087_v22  ;;  %v6322_v12 = vld [vmem:[%s7902_s1 + $0xa10] sm:$0xff]   ;;  %v6332_v22 = vld [vmem:[%s7902_s1 + $0xaa0] sm:$0xff]  }
 0x124   :  { %4269 = vmatmul.mubr.bf16.vlgmr.msra.gmra.mrb[32].mxu1 %v1088_v18  ;;  %5786 = vmatprep.subr.bf16.mxu0 %v6284_v19  ;;  %v6324_v14 = vld [vmem:[%s7902_s1 + $0xa90] sm:$0xff]   ;;  %v6328_v18 = vld [vmem:[%s7902_s1 + $0xa98] sm:$0xff]   ;;  %v6329_v19 = vld [vmem:[%s7902_s1 + $0xa60] sm:$0xff]  }
 0x125   :  { %5807 = vmatpush3.bf16.msra.mxu1 %v6283_v16  ;;  %4348 = vmatprep.mubr.bf16.mxu1 %v1091_v26  ;;  %v6326_v16 = vld [vmem:[%s7902_s1 + $0xa18] sm:$0xff]   ;;  %v6335_v26 = vld [vmem:[%s7902_s1 + $0xae8] sm:$0xff]  }
 0x126   :  { %5808 = vmatprep.subr.bf16.mxu1 %v6286_v24  ;;  %v6333_v24 = vld [vmem:[%s7902_s1 + $0xa68] sm:$0xff]  }
 0x127   :  { %5787 = vmatpush3.bf16.msra.mxu0 %v6285_v21  ;;  %v6331_v21 = vld [vmem:[%s7902_s1 + $0xae0] sm:$0xff]  }
 0x128   :  { %5788 = vmatprep.subr.bf16.mxu0 %v6288_v27 }
 0x129   :  { %5809 = vmatpush3.bf16.msra.mxu1 %v6287_v25  ;;  %v6334_v25 = vld [vmem:[%s7902_s1 + $0xa28] sm:$0xff]  }
 0x12a   :  { %5810 = vmatprep.subr.bf16.mxu1 %v6290_v30 }
 0x12b   :  { %5789 = vmatpush3.bf16.msra.mxu0 %v6289_v28  ;;  %v6336_v28 = vld [vmem:[%s7902_s1 + $0xaa8] sm:$0xff]  }
 0x12c   :  { %5790 = vmatprep.subr.bf16.mxu0 %v6292_v32 }
 0x12d   :  { %5811 = vmatpush3.bf16.msra.mxu1 %v6291_v31  ;;  %v6337_v31 = vld [vmem:[%s7902_s1 + $0xa70] sm:$0xff]  }
 0x12e   :  { %5812 = vmatprep.subr.bf16.mxu1 %v6294_v35 }
 0x12f   :  { %5791 = vmatpush3.bf16.msra.mxu0 %v6293_v33 }
 0x130   :  { %5792 = vmatprep.subr.bf16.mxu0 %v6296_v37 }
 0x131   :  { %5813 = vmatpush3.bf16.msra.mxu1 %v6295_v36 }
 0x132   :  { %5814 = vmatprep.subr.bf16.mxu1 %v6298_v39  ;;  %v6339_v39 = vld [vmem:[%s7902_s1 + $0xaf0] sm:$0xff]  }
 0x133   :  { %5793 = vmatpush3.bf16.msra.mxu0 %v6297_v38  ;;  %v6338_v38 = vld [vmem:[%s7902_s1 + $0xa30] sm:$0xff]  }
 0x134   :  { %5794 = vmatprep.subr.bf16.mxu0 %v6300_v41 }
 0x135   :  { %v5492_v44 = vpop.f32.mrb[8].mxu0  ;;  %5815 = vmatpush3.bf16.msra.mxu1 %v6299_v40 }
 0x136   :  { %v5493_v46 = vpop.f32.mrb[9].mxu0  ;;  %5816 = vmatprep.subr.bf16.mxu1 %v6302_v43 }
 0x137   :  { %v5494_v48 = vadd.f32 %v5493_v46, %v5492_v44  ;;  %v5495_v49 = vpop.f32.mrb[10].mxu0  ;;  %v5514_v50 = vpop.f32.mrb[8].mxu1  ;;  %5795 = vmatpush3.bf16.msra.mxu0 %v6301_v42  ;;  %v6340_v42 = vld [vmem:[%s7902_s1 + $0xab0] sm:$0xff]  }
 0x138   :  { %v5496_v53 = vpop.f32.mrb[11].mxu0  ;;  %v5515_v54 = vpop.f32.mrb[9].mxu1  ;;  %5796 = vmatprep.subr.bf16.mxu0 %v6304_v47  ;;  %v6342_v47 = vld [vmem:[%s7902_s1 + $0xa38] sm:$0xff]   ;;  %v47_v49 = vld [vmem:[%s7903_s0 + $0x28] sm:$0xff] }
 0x139   :  { %v3751_v55 = vadd.f32 %v5494_v48, %v7416_v1  ;;  %v5516_v56 = vadd.f32 %v5515_v54, %v5514_v50  ;;  %v5517_v58 = vpop.f32.mrb[10].mxu1  ;;  %5817 = vmatpush3.bf16.msra.mxu1 %v6303_v45  ;;  %v1073_v1 = vrot.slane %v7439_v13, %v6584_v34  ;;  %v6323_v13 = vld [vmem:[%s7902_s1 + $0xad0] sm:$0xff]   ;;  %v6341_v45 = vld [vmem:[%s7902_s1 + $0xa78] sm:$0xff]   ;;  %v1099_v50 = vrot.slane %v47_v49, %v6584_v34  ;;  %v6345_v53 = vld [vmem:[%s7902_s1 + $0xb40] sm:$0xff]  }
 0x13a   :  { %v5518_v60 = vpop.f32.mrb[11].mxu1  ;;  %5818 = vmatprep.subr.bf16.mxu1 %v6306_v52  ;;  %v6343_v48 = vld [vmem:[%s7902_s1 + $0xaf8] sm:$0xff]   ;;  %v1092_v52 = vcombine.high %v47_v49, %v47_v49  ;;  %v6379_v49 = vld [vmem:[%s7902_s1 + $0xc08] sm:$0xff]  }
 0x13b   :  { %v7527_v61 = vadd.f32 %v5516_v56, %v3751_v55  ;;  %5797 = vmatpush3.bf16.msra.mxu0 %v6305_v51  ;;  %v1089_v6 = vcombine.high %v1073_v1, %v1073_v1  ;;  %v6344_v51 = vld [vmem:[%s7902_s1 + $0xab8] sm:$0xff]   ;;  %v1107_v54 = vcombine.high %v1099_v50, %v1099_v50  ;;  %v1115_v55 = vrot.slane %v1099_v50, %v6584_v34  ;;  %v6380_v50 = vld [vmem:[%s7902_s1 + $0xc10] sm:$0xff]  }
 0x13c   :  { %5798 = vmatprep.subr.bf16.mxu0 %v6308_v59  ;;  %v7648_v56 = vrot.slane %v1092_v52, %v6584_v34  ;;  %v6346_v59 = vld [vmem:[%s7902_s1 + $0xb00] sm:$0xff]  }
 0x13d   :  { %5819 = vmatpush3.bf16.msra.mxu1 %v6307_v57  ;;  %v6347_v57 = vld [vmem:[%s7902_s1 + $0xbc0] sm:$0xff]   ;;  %v1129_v58 = vrot.slane %v1107_v54, %v6584_v34 }
 0x13e   :  { %5820 = vmatprep.subr.bf16.mxu1 %v6310_v63  ;;  %v1108_v60 = vcombine.high %v7648_v56, %v7648_v56  ;;  %v6382_v52 = vld [vmem:[%s7902_s1 + $0xc20] sm:$0xff]  }
 0x13f   :  { %5799 = vmatpush3.bf16.msra.mxu0 %v6309_v62  ;;  %v6349_v62 = vld [vmem:[%s7902_s1 + $0xb48] sm:$0xff]   ;;  %v1139_v63 = vcombine.high %v1129_v58, %v1129_v58 }
 0x140   :  { %5828 = vmatprep.subr.bf16.mxu0 %v6313_v2  ;;  %v6351_v2 = vld [vmem:[%s7902_s1 + $0xbc8] sm:$0xff]  }
 0x141   :  { %5821 = vmatpush3.bf16.msra.mxu1 %v6312_v0  ;;  %v6348_v0 = vld [vmem:[%s7902_s1 + $0xb80] sm:$0xff]  }
 0x142   :  { %4309 = vmatmul.mubr.bf16.vlgmr.msra.gmra.mrb[36].mxu0 %v1073_v1  ;;  %5850 = vmatprep.subr.bf16.mxu1 %v6315_v4  ;;  %v1136_v1 = vrot.slane %v1108_v60, %v6584_v34 }
 0x143   :  { %5829 = vmatpush3.bf16.msra.mxu0 %v6314_v3  ;;  %4388 = vmatprep.mubr.bf16.mxu0 %v1129_v58  ;;  %v6350_v3 = vld [vmem:[%s7902_s1 + $0xb08] sm:$0xff]  }
 0x144   :  { %4349 = vmatmul.mubr.bf16.vlgmr.msra.gmra.mrb[36].mxu1 %v1089_v6  ;;  %5830 = vmatprep.subr.bf16.mxu0 %v6317_v7  ;;  %v1140_v4 = vcombine.high %v1136_v1, %v1136_v1  ;;  %v6352_v6 = vld [vmem:[%s7902_s1 + $0xb88] sm:$0xff]   ;;  %v6355_v7 = vld [vmem:[%s7902_s1 + $0xbd0] sm:$0xff]  }
 0x145   :  { %5851 = vmatpush3.bf16.msra.mxu1 %v6316_v5  ;;  %4428 = vmatprep.mubr.bf16.mxu1 %v1139_v63  ;;  %v6353_v5 = vld [vmem:[%s7902_s1 + $0xb50] sm:$0xff]  }
 0x146   :  { %5852 = vmatprep.subr.bf16.mxu1 %v6319_v9  ;;  %v6357_v9 = vld [vmem:[%s7902_s1 + $0xb58] sm:$0xff]  }
 0x147   :  { %5831 = vmatpush3.bf16.msra.mxu0 %v6318_v8  ;;  %v6354_v8 = vld [vmem:[%s7902_s1 + $0xb10] sm:$0xff]  }
 0x148   :  { %5832 = vmatprep.subr.bf16.mxu0 %v6321_v11  ;;  %v6359_v11 = vld [vmem:[%s7902_s1 + $0xbd8] sm:$0xff]  }
 0x149   :  { %5853 = vmatpush3.bf16.msra.mxu1 %v6320_v10  ;;  %v6356_v10 = vld [vmem:[%s7902_s1 + $0xb90] sm:$0xff]  }
 0x14a   :  { %5854 = vmatprep.subr.bf16.mxu1 %v6323_v13  ;;  %v6361_v13 = vld [vmem:[%s7902_s1 + $0xb60] sm:$0xff]  }
 0x14b   :  { %5833 = vmatpush3.bf16.msra.mxu0 %v6322_v12  ;;  %v6358_v12 = vld [vmem:[%s7902_s1 + $0xb18] sm:$0xff]  }
 0x14c   :  { %5834 = vmatprep.subr.bf16.mxu0 %v6325_v15  ;;  %v6363_v15 = vld [vmem:[%s7902_s1 + $0xbe0] sm:$0xff]  }
 0x14d   :  { %5855 = vmatpush3.bf16.msra.mxu1 %v6324_v14  ;;  %v6360_v14 = vld [vmem:[%s7902_s1 + $0xb98] sm:$0xff]  }
 0x14e   :  { %5856 = vmatprep.subr.bf16.mxu1 %v6327_v17  ;;  %v6365_v17 = vld [vmem:[%s7902_s1 + $0xb68] sm:$0xff]  }
 0x14f   :  { %5835 = vmatpush3.bf16.msra.mxu0 %v6326_v16  ;;  %v6362_v16 = vld [vmem:[%s7902_s1 + $0xb20] sm:$0xff]  }
 0x150   :  { %5836 = vmatprep.subr.bf16.mxu0 %v6329_v19 }
 0x151   :  { %5857 = vmatpush3.bf16.msra.mxu1 %v6328_v18  ;;  %v6364_v18 = vld [vmem:[%s7902_s1 + $0xba0] sm:$0xff]  }
 0x152   :  { %5858 = vmatprep.subr.bf16.mxu1 %v6331_v21 }
 0x153   :  { %5837 = vmatpush3.bf16.msra.mxu0 %v6330_v20  ;;  %v6367_v20 = vld [vmem:[%s7902_s1 + $0xbe8] sm:$0xff]  }
 0x154   :  { %5838 = vmatprep.subr.bf16.mxu0 %v6333_v24 }
 0x155   :  { %v5536_v27 = vpop.f32.mrb[12].mxu0  ;;  %5859 = vmatpush3.bf16.msra.mxu1 %v6332_v22  ;;  %v6366_v22 = vld [vmem:[%s7902_s1 + $0xb28] sm:$0xff]  }
 0x156   :  { %v5537_v30 = vpop.f32.mrb[13].mxu0  ;;  %5860 = vmatprep.subr.bf16.mxu1 %v6335_v26 }
 0x157   :  { %v5538_v32 = vadd.f32 %v5537_v30, %v5536_v27  ;;  %v5539_v33 = vpop.f32.mrb[14].mxu0  ;;  %v5558_v35 = vpop.f32.mrb[12].mxu1  ;;  %5839 = vmatpush3.bf16.msra.mxu0 %v6334_v25  ;;  %v6368_v27 = vld [vmem:[%s7902_s1 + $0xba8] sm:$0xff]  }
 0x158   :  { %v5540_v36 = vpop.f32.mrb[15].mxu0  ;;  %v5559_v37 = vpop.f32.mrb[13].mxu1  ;;  %5840 = vmatprep.subr.bf16.mxu0 %v6337_v31 }
 0x159   :  { %v3831_v40 = vadd.f32 %v5538_v32, %v7527_v61  ;;  %v5560_v41 = vadd.f32 %v5559_v37, %v5558_v35  ;;  %v5561_v43 = vpop.f32.mrb[14].mxu1  ;;  %5861 = vmatpush3.bf16.msra.mxu1 %v6336_v28  ;;  %v1137_v61 = vcombine.high %v1115_v55, %v1115_v55  ;;  %v6369_v28 = vld [vmem:[%s7902_s1 + $0xb70] sm:$0xff]  }
 0x15a   :  { %v5562_v46 = vpop.f32.mrb[15].mxu1  ;;  %5862 = vmatprep.subr.bf16.mxu1 %v6339_v39  ;;  %v6371_v35 = vld [vmem:[%s7902_s1 + $0xbf0] sm:$0xff]   ;;  %v6374_v43 = vld [vmem:[%s7902_s1 + $0xb38] sm:$0xff]  }
 0x15b   :  { %v7625_v44 = vadd.f32 %v5560_v41, %v3831_v40  ;;  %5841 = vmatpush3.bf16.msra.mxu0 %v6338_v38  ;;  %v6370_v37 = vld [vmem:[%s7902_s1 + $0xb30] sm:$0xff]   ;;  %v6373_v40 = vld [vmem:[%s7902_s1 + $0xb78] sm:$0xff]   ;;  %v6378_v46 = vld [vmem:[%s7902_s1 + $0xc00] sm:$0xff]  }
 0x15c   :  { %5842 = vmatprep.subr.bf16.mxu0 %v6341_v45  ;;  %v6372_v41 = vld [vmem:[%s7902_s1 + $0xbb0] sm:$0xff]   ;;  %v6377_v45 = vld [vmem:[%s7902_s1 + $0xbb8] sm:$0xff]  }
 0x15d   :  { %5863 = vmatpush3.bf16.msra.mxu1 %v6340_v42  ;;  %v6375_v42 = vld [vmem:[%s7902_s1 + $0xbf8] sm:$0xff]  }
 0x15e   :  { %5864 = vmatprep.subr.bf16.mxu1 %v6343_v48 }
 0x15f   :  { %5843 = vmatpush3.bf16.msra.mxu0 %v6342_v47  ;;  %v6425_v47 = vmov 0.0  }
 0x160   :  { %5872 = vmatprep.subr.bf16.mxu0 %v6345_v53 }
 0x161   :  { %5865 = vmatpush3.bf16.msra.mxu1 %v6344_v51  ;;  %v6381_v51 = vld [vmem:[%s7902_s1 + $0xc18] sm:$0xff]  }
 0x162   :  { %5894 = vmatprep.subr.bf16.mxu1 %v6347_v57  ;;  %4389 = vmatmul.mubr.bf16.vlgmr.msra.gmra.mrb[40].mxu0 %v1115_v55  ;;  %v6383_v55 = vld [vmem:[%s7902_s1 + $0xc28] sm:$0xff]  }
 0x163   :  { %5873 = vmatpush3.bf16.msra.mxu0 %v6346_v59  ;;  %4468 = vmatprep.mubr.bf16.mxu0 %v1136_v1 }
 0x164   :  { %4429 = vmatmul.mubr.bf16.vlgmr.msra.gmra.mrb[40].mxu1 %v1137_v61  ;;  %5874 = vmatprep.subr.bf16.mxu0 %v6349_v62 }
 0x165   :  { %5895 = vmatpush3.bf16.msra.mxu1 %v6348_v0  ;;  %4508 = vmatprep.mubr.bf16.mxu1 %v1140_v4  ;;  %v6384_v0 = vld [vmem:[%s7902_s1 + $0xc30] sm:$0xff]  }
 0x166   :  { %5896 = vmatprep.subr.bf16.mxu1 %v6351_v2  ;;  %v4961_v4 = vld.sshfl [vmem:[%s7903_s0 + $0x30] sm:$0x1 pattern:$0x75316420] }
 0x167   :  { %5875 = vmatpush3.bf16.msra.mxu0 %v6350_v3  ;;  %v6385_v3 = vld [vmem:[%s7902_s1 + $0xc38] sm:$0xff]  }
 0x168   :  { %5876 = vmatprep.subr.bf16.mxu0 %v6353_v5  ;;  %v1154_v5 = vrot.slane %v4961_v4, %v6584_v34 }
 0x169   :  { %5897 = vmatpush3.bf16.msra.mxu1 %v6352_v6 }
 0x16a   :  { %5898 = vmatprep.subr.bf16.mxu1 %v6355_v7 }
 0x16b   :  { %5877 = vmatpush3.bf16.msra.mxu0 %v6354_v8 }
 0x16c   :  { %5878 = vmatprep.subr.bf16.mxu0 %v6357_v9 }
 0x16d   :  { %5899 = vmatpush3.bf16.msra.mxu1 %v6356_v10 }
 0x16e   :  { %5900 = vmatprep.subr.bf16.mxu1 %v6359_v11 }
 0x16f   :  { %5879 = vmatpush3.bf16.msra.mxu0 %v6358_v12 }
 0x170   :  { %5880 = vmatprep.subr.bf16.mxu0 %v6361_v13 }
 0x171   :  { %5901 = vmatpush3.bf16.msra.mxu1 %v6360_v14 }
 0x172   :  { %5902 = vmatprep.subr.bf16.mxu1 %v6363_v15 }
 0x173   :  { %5881 = vmatpush3.bf16.msra.mxu0 %v6362_v16 }
 0x174   :  { %5882 = vmatprep.subr.bf16.mxu0 %v6365_v17 }
 0x175   :  { %v5580_v19 = vpop.f32.mrb[16].mxu0  ;;  %5903 = vmatpush3.bf16.msra.mxu1 %v6364_v18 }
 0x176   :  { %v5581_v21 = vpop.f32.mrb[17].mxu0  ;;  %5904 = vmatprep.subr.bf16.mxu1 %v6367_v20 }
 0x177   :  { %v5582_v24 = vadd.f32 %v5581_v21, %v5580_v19  ;;  %v5583_v25 = vpop.f32.mrb[18].mxu0  ;;  %v5602_v26 = vpop.f32.mrb[16].mxu1  ;;  %5883 = vmatpush3.bf16.msra.mxu0 %v6366_v22 }
 0x178   :  { %v5584_v30 = vpop.f32.mrb[19].mxu0  ;;  %v5603_v31 = vpop.f32.mrb[17].mxu1  ;;  %5884 = vmatprep.subr.bf16.mxu0 %v6369_v28 }
 0x179   :  { %v3911_v32 = vadd.f32 %v5582_v24, %v7625_v44  ;;  %v5604_v33 = vadd.f32 %v5603_v31, %v5602_v26  ;;  %v5605_v36 = vpop.f32.mrb[18].mxu1  ;;  %5905 = vmatpush3.bf16.msra.mxu1 %v6368_v27  ;;  %v1122_v44 = vrot.slane %v7648_v56, %v6584_v34  ;;  %v6386_v31 = vld [vmem:[%s7905_s3] sm:$0xff]  }
 0x17a   :  { %v5606_v38 = vpop.f32.mrb[19].mxu1  ;;  %5906 = vmatprep.subr.bf16.mxu1 %v6371_v35 }
 0x17b   :  { %v3951_v39 = vadd.f32 %v5604_v33, %v3911_v32  ;;  %5885 = vmatpush3.bf16.msra.mxu0 %v6370_v37  ;;  %v1138_v48 = vcombine.high %v1122_v44, %v1122_v44  ;;  %v6387_v32 = vld [vmem:[%s7905_s3 + $0x8] sm:$0xff]   ;;  %v6388_v33 = vld [vmem:[%s7905_s3 + $0x10] sm:$0xff]  }
 0x17c   :  { %5886 = vmatprep.subr.bf16.mxu0 %v6373_v40 }
 0x17d   :  { %5907 = vmatpush3.bf16.msra.mxu1 %v6372_v41 }
 0x17e   :  { %5908 = vmatprep.subr.bf16.mxu1 %v6375_v42  ;;  %v6389_v42 = vld [vmem:[%s7905_s3 + $0x18] sm:$0xff]  }
 0x17f   :  { %5887 = vmatpush3.bf16.msra.mxu0 %v6374_v43 }
 0x180   :  { %5952 = vmatprep.subr.bf16.mxu0 %v6425_v47 }
 0x181   :  { %5909 = vmatpush3.bf16.msra.mxu1 %v6377_v45 }
 0x182   :  { %4469 = vmatmul.mubr.bf16.vlgmr.msra.gmra.mrb[44].mxu0 %v1122_v44  ;;  %5972 = vmatprep.subr.bf16.mxu1 %v6425_v47 }
 0x183   :  { %5953 = vmatpush3.bf16.msra.mxu0 %v6378_v46  ;;  %5968 = vmatprep.mubr.msk.bf16.mxu0 %vm6426_vm0, %v6425_v47 }
 0x184   :  { %4509 = vmatmul.mubr.bf16.vlgmr.msra.gmra.mrb[44].mxu1 %v1138_v48  ;;  %5954 = vmatprep.subr.bf16.mxu0 %v6425_v47 }
 0x185   :  { %5980 = vmatprep.mubr.msk.bf16.mxu1 %vm6426_vm0, %v6425_v47  ;;  %5973 = vmatpush3.bf16.msra.mxu1 %v6386_v31  ;;  %v6393_v31 = vld [vmem:[%s7906_s5 + $0x10] ss:$8 sps:$4 sm:$0xff]  }
 0x186   :  { %5974 = vmatprep.subr.bf16.mxu1 %v6425_v47 }
 0x187   :  { %5955 = vmatpush3.bf16.msra.mxu0 %v6379_v49  ;;  %v6392_v49 = vld [vmem:[%s7906_s5 + $0x4] ss:$8 sps:$4 sm:$0xff]  }
 0x188   :  { %5956 = vmatprep.subr.bf16.mxu0 %v6425_v47 }
 0x189   :  { %5975 = vmatpush3.bf16.msra.mxu1 %v6387_v32  ;;  %v6398_v32 = vld [vmem:[%s7906_s5 + $0x24] ss:$8 sps:$4 sm:$0xff]  }
 0x18a   :  { %5976 = vmatprep.subr.bf16.mxu1 %v6425_v47 }
 0x18b   :  { %5957 = vmatpush3.bf16.msra.mxu0 %v6380_v50 }
 0x18c   :  { %5958 = vmatprep.subr.bf16.mxu0 %v6425_v47 }
 0x18d   :  { %5977 = vmatpush3.bf16.msra.mxu1 %v6388_v33  ;;  %v6396_v33 = vld [vmem:[%s7906_s5 + $0x20] ss:$8 sps:$4 sm:$0xff]  }
 0x18e   :  { %5978 = vmatprep.subr.bf16.mxu1 %v6425_v47 }
 0x18f   :  { %5959 = vmatpush3.bf16.msra.mxu0 %v6381_v51 }
 0x190   :  { %5960 = vmatprep.subr.bf16.mxu0 %v6425_v47 }
 0x191   :  { %5979 = vmatpush3.bf16.msra.mxu1 %v6389_v42  ;;  %v6406_v42 = vld [vmem:[%s7907_s7 + $0x50] sm:$0xff]  }
 0x192   :  { %4706 = vmatprep.subr.bf16.mxu1 %v6392_v49 }
 0x193   :  { %5961 = vmatpush3.bf16.msra.mxu0 %v6382_v52 }
 0x194   :  { %5962 = vmatprep.subr.bf16.mxu0 %v6425_v47 }
 0x195   :  { %v5624_v53 = vpop.f32.mrb[20].mxu0 }
 0x196   :  { %v5625_v54 = vpop.f32.mrb[21].mxu0 }
 0x197   :  { %v5626_v56 = vadd.f32 %v5625_v54, %v5624_v53  ;;  %v5627_v57 = vpop.f32.mrb[22].mxu0  ;;  %v5646_v58 = vpop.f32.mrb[20].mxu1  ;;  %5963 = vmatpush3.bf16.msra.mxu0 %v6383_v55 }
 0x198   :  { %v5628_v59 = vpop.f32.mrb[23].mxu0  ;;  %v5647_v60 = vpop.f32.mrb[21].mxu1  ;;  %5964 = vmatprep.subr.bf16.mxu0 %v6425_v47 }
 0x199   :  { %v3991_v61 = vadd.f32 %v5626_v56, %v3951_v39  ;;  %v5648_v62 = vadd.f32 %v5647_v60, %v5646_v58  ;;  %v5649_v63 = vpop.f32.mrb[22].mxu1 }
 0x19a   :  { %v5650_v1 = vpop.f32.mrb[23].mxu1 }
 0x19b   :  { %v4031_v2 = vadd.f32 %v5648_v62, %v3991_v61  ;;  %5965 = vmatpush3.bf16.msra.mxu0 %v6384_v0 }
 0x19c   :  { %5966 = vmatprep.subr.bf16.mxu0 %v6425_v47 }
 0x19f   :  { %5967 = vmatpush3.bf16.msra.mxu0 %v6385_v3 }
 0x1a2   :  { %5969 = vmatmul.mubr.bf16.vlgmr.msra.gmra.mrb[48].mxu0 %v1154_v5 }
 0x1b5   :  { %v5668_v6 = vpop.f32.mrb[24].mxu0 }
 0x1b6   :  { %v5669_v7 = vpop.f32.mrb[25].mxu0 }
 0x1b7   :  { %v5670_v8 = vadd.f32 %v5669_v7, %v5668_v6  ;;  %v5671_v9 = vpop.f32.mrb[26].mxu0  ;;  %v5690_v10 = vpop.f32.mrb[24].mxu1 }
 0x1b8   :  { %v5672_v11 = vpop.f32.mrb[27].mxu0  ;;  %v5691_v12 = vpop.f32.mrb[25].mxu1 }
 0x1b9   :  { %v4071_v13 = vadd.f32 %v5670_v8, %v4031_v2  ;;  %v5692_v14 = vadd.f32 %v5691_v12, %v5690_v10  ;;  %v5693_v15 = vpop.f32.mrb[26].mxu1 }
 0x1ba   :  { %v5694_v16 = vpop.f32.mrb[27].mxu1 }
 0x1bb   :  { %v4111_v17 = vadd.f32 %v5692_v14, %v4071_v13 }
 0x1d5   :  { %v5712_v18 = vpop.f32.mrb[28].mxu0 }
 0x1d6   :  { %v5713_v19 = vpop.f32.mrb[29].mxu0 }
 0x1d7   :  { %v5714_v20 = vadd.f32 %v5713_v19, %v5712_v18  ;;  %v5715_v21 = vpop.f32.mrb[30].mxu0  ;;  %v5734_v22 = vpop.f32.mrb[28].mxu1 }
 0x1d8   :  { %v5716_v34 = vpop.f32.mrb[31].mxu0  ;;  %v5735_v24 = vpop.f32.mrb[29].mxu1 }
 0x1d9   :  { %v4151_v25 = vadd.f32 %v5714_v20, %v4111_v17  ;;  %v5736_v26 = vadd.f32 %v5735_v24, %v5734_v22  ;;  %v5737_v27 = vpop.f32.mrb[30].mxu1 }
 0x1da   :  { %v5738_v28 = vpop.f32.mrb[31].mxu1  ;;  %v6390_v27 = vld [vmem:[%s7906_s5] ss:$8 sps:$4 sm:$0xff]  }
 0x1db   :  { %v4191_v30 = vadd.f32 %v5736_v26, %v4151_v25 }
 0x1f5   :  { %v5756_v35 = vpop.f32.mrb[32].mxu0 }
 0x1f6   :  { %v5757_v36 = vpop.f32.mrb[33].mxu0 }
 0x1f7   :  { %v5758_v37 = vadd.f32 %v5757_v36, %v5756_v35  ;;  %v5759_v38 = vpop.f32.mrb[34].mxu0  ;;  %v5778_v39 = vpop.f32.mrb[32].mxu1  ;;  %v6401_v35 = vld [vmem:[%s7906_s5 + $0x34] ss:$8 sps:$4 sm:$0xff]   ;;  %v6399_v36 = vld [vmem:[%s7906_s5 + $0x30] ss:$8 sps:$4 sm:$0xff]  }
 0x1f8   :  { %v5760_v40 = vpop.f32.mrb[35].mxu0  ;;  %v5779_v41 = vpop.f32.mrb[33].mxu1  ;;  %v6402_v38 = vld [vmem:[%s7907_s7 + $0x40] sm:$0xff]  }
 0x1f9   :  { %v4231_v43 = vadd.f32 %v5758_v37, %v4191_v30  ;;  %v5780_v44 = vadd.f32 %v5779_v41, %v5778_v39  ;;  %v5781_v45 = vpop.f32.mrb[34].mxu1  ;;  %v6395_v30 = vld [vmem:[%s7906_s5 + $0x14] ss:$8 sps:$4 sm:$0xff]   ;;  %v6427_v37 = vmov 0   ;;  %v6403_v39 = vld [vmem:[%s7907_s7] sm:$0xff]   ;;  %5930 = vmatprep.subr.bf16.mxu0 %v6402_v38  ;;  %v6404_v40 = vld [vmem:[%s7907_s7 + $0x48] sm:$0xff]  }
 0x1fa   :  { %v5782_v46 = vpop.f32.mrb[35].mxu1  ;;  %5931 = vmatpush3.bf16.msra.mxu0 %v6403_v39  ;;  %v6405_v41 = vld [vmem:[%s7907_s7 + $0x8] sm:$0xff]   ;;  %v6409_v45 = vld [vmem:[%s7907_s7 + $0x18] sm:$0xff]  }
 0x1fb   :  { %v4271_v48 = vadd.f32 %v5780_v44, %v4231_v43  ;;  %5932 = vmatprep.subr.bf16.mxu0 %v6404_v40  ;;  %v6407_v43 = vld [vmem:[%s7907_s7 + $0x10] sm:$0xff]   ;;  %v6408_v44 = vld [vmem:[%s7907_s7 + $0x58] sm:$0xff]   ;;  %v5354_v46 = vld [vmem:[%s7908_s4] ss:$0 sm:$0xff] }
 0x1fe   :  { %5933 = vmatpush3.bf16.msra.mxu0 %v6405_v41 }
 0x1ff   :  { %5934 = vmatprep.subr.bf16.mxu0 %v6406_v42 }
 0x202   :  { %5935 = vmatpush3.bf16.msra.mxu0 %v6407_v43 }
 0x203   :  { %5936 = vmatprep.subr.bf16.mxu0 %v6408_v44 }
 0x206   :  { %5937 = vmatpush3.bf16.msra.mxu0 %v6409_v45 }
 0x215   :  { %v5800_v50 = vpop.f32.mrb[36].mxu0 }
 0x216   :  { %v5801_v51 = vpop.f32.mrb[37].mxu0 }
 0x217   :  { %v5802_v47 = vadd.f32 %v5801_v51, %v5800_v50  ;;  %v5803_v52 = vpop.f32.mrb[38].mxu0  ;;  %v5822_v53 = vpop.f32.mrb[36].mxu1 }
 0x218   :  { %v5804_v54 = vpop.f32.mrb[39].mxu0  ;;  %v5823_v55 = vpop.f32.mrb[37].mxu1 }
 0x219   :  { %v4311_v56 = vadd.f32 %v5802_v47, %v4271_v48  ;;  %v5824_v57 = vadd.f32 %v5823_v55, %v5822_v53  ;;  %v5825_v58 = vpop.f32.mrb[38].mxu1  ;;  %v6410_v54 = vld [vmem:[%s7907_s7 + $0x60] sm:$0xff]  }
 0x21a   :  { %v5826_v59 = vpop.f32.mrb[39].mxu1  ;;  %v6411_v55 = vld [vmem:[%s7907_s7 + $0x20] sm:$0xff]   ;;  %5938 = vmatprep.subr.bf16.mxu0 %v6410_v54  ;;  %v6414_v58 = vld [vmem:[%s7907_s7 + $0x70] sm:$0xff]  }
 0x21b   :  { %v4351_v60 = vadd.f32 %v5824_v57, %v4311_v56  ;;  %5939 = vmatpush3.bf16.msra.mxu0 %v6411_v55  ;;  %v6412_v56 = vld [vmem:[%s7907_s7 + $0x68] sm:$0xff]   ;;  %v6415_v59 = vld [vmem:[%s7907_s7 + $0x30] sm:$0xff]  }
 0x21c   :  { %v6413_v57 = vld [vmem:[%s7907_s7 + $0x28] sm:$0xff]   ;;  %5940 = vmatprep.subr.bf16.mxu0 %v6412_v56 }
 0x21f   :  { %5941 = vmatpush3.bf16.msra.mxu0 %v6413_v57 }
 0x220   :  { %5942 = vmatprep.subr.bf16.mxu0 %v6414_v58 }
 0x223   :  { %5943 = vmatpush3.bf16.msra.mxu0 %v6415_v59 }
 0x235   :  { %v5844_v61 = vpop.f32.mrb[40].mxu0 }
 0x236   :  { %v5845_v62 = vpop.f32.mrb[41].mxu0 }
 0x237   :  { %v5846_v63 = vadd.f32 %v5845_v62, %v5844_v61  ;;  %v5847_v0 = vpop.f32.mrb[42].mxu0  ;;  %v5866_v1 = vpop.f32.mrb[40].mxu1  ;;  %v6417_v61 = vld [vmem:[%s7907_s7 + $0x38] sm:$0xff]   ;;  %v4655_v62 = vsub.s32 0, %v6569_v29 }
 0x238   :  { %v5848_v2 = vpop.f32.mrb[43].mxu0  ;;  %v5867_v3 = vpop.f32.mrb[41].mxu1  ;;  %v4659_v0 = vsub.s32 1, %v6569_v29  ;;  %v5369_v29 = vld [vmem:[%s7910_s8] ss:$0 sm:$0xff] }
 0x239   :  { %v4391_v4 = vadd.f32 %v5846_v63, %v4351_v60  ;;  %v5868_v5 = vadd.f32 %v5867_v3, %v5866_v1  ;;  %v5869_v6 = vpop.f32.mrb[42].mxu1  ;;  %v6416_v60 = vld [vmem:[%s7907_s7 + $0x78] sm:$0xff]   ;;  %v4651_v63 = vld [vmem:[%s7909_s6] sm:$0x3] }
 0x23a   :  { %v5870_v7 = vpop.f32.mrb[43].mxu1  ;;  %5944 = vmatprep.subr.bf16.mxu0 %v6416_v60  ;;  %v4656_v1 = vrot.slane %v4651_v63, %v4655_v62  ;;  %v4660_v2 = vrot.slane %v4651_v63, %v4659_v0 }
 0x23b   :  { %v4431_v8 = vadd.f32 %v5868_v5, %v4391_v4  ;;  %5945 = vmatpush3.bf16.msra.mxu0 %v6417_v61 }
 0x255   :  { %v5888_v9 = vpop.f32.mrb[44].mxu0 }
 0x256   :  { %v5889_v10 = vpop.f32.mrb[45].mxu0 }
 0x257   :  { %v5890_v11 = vadd.f32 %v5889_v10, %v5888_v9  ;;  %v5891_v12 = vpop.f32.mrb[46].mxu0  ;;  %v5910_v13 = vpop.f32.mrb[44].mxu1 }
 0x258   :  { %v5892_v14 = vpop.f32.mrb[47].mxu0  ;;  %v5911_v15 = vpop.f32.mrb[45].mxu1 }
 0x259   :  { %v4471_v16 = vadd.f32 %v5890_v11, %v4431_v8  ;;  %v5912_v17 = vadd.f32 %v5911_v15, %v5910_v13  ;;  %v5913_v18 = vpop.f32.mrb[46].mxu1 }
 0x25a   :  { %v5914_v19 = vpop.f32.mrb[47].mxu1 }
 0x25b   :  { %v4511_v20 = vadd.f32 %v5912_v17, %v4471_v16  ;;  %v4927_v19 = vld [vmem:[%s7911_s11] sm:$0x3] }
 0x275   :  { %v4550_v21 = vpop.f32.mrb[48].mxu0 }
 0x276   :  { %v4551_v22 = vadd.f32 %v4550_v21, %v4511_v20  ;;  %v5970_v34 = vpop.f32.mrb[49].mxu0  ;;  %v5386_v21 = vld [vmem:[%s7912_s9] ss:$0 sm:$0xff] }
 0x277   :  { %v4553_v24 = vpop.f32.mrb[50].mxu0 }
 0x278   :  { %v4556_v25 = vmax.f32 %v4551_v22, 0.0  ;;  %v5971_v26 = vpop.f32.mrb[51].mxu0 }
 0x27a   :  { %v4557_v28 = vpack.c.bf16 %v4556_v25, %v4556_v25  ;;  %v5387_v25 = vld [vmem:[%s7913_s10] ss:$0 sm:$0xff] }
 0x27c   :  { %5981 = vmatmul.mubr.msk.bf16.vlgmr.msra.gmra.mrb[48].mxu1 %vm4597_vm1, %v4557_v28 }
 0x27d   :  { %4707 = vmatpush1.bf16.msra.mxu1 %v6390_v27  ;;  %4738 = vmatprep.mubr.bf16.mxu1 %v6427_v37 }
 0x27e   :  { %4708 = vmatprep.subr.bf16.mxu1 %v6395_v30  ;;  %v4952_v30 = vand.u32 127, %v851_v23 }
 0x280   :  { %vm4953_vm3 = vcmp.eq.s32.totalorder %v4952_v30, 3 }
 0x281   :  { %4709 = vmatpush1.bf16.msra.mxu1 %v6393_v31 }
 0x282   :  { %4710 = vmatprep.subr.bf16.mxu1 %v6398_v32 }
 0x285   :  { %4711 = vmatpush1.bf16.msra.mxu1 %v6396_v33 }
 0x286   :  { %4712 = vmatprep.subr.bf16.mxu1 %v6401_v35 }
 0x289   :  { %4713 = vmatpush1.bf16.msra.mxu1 %v6399_v36 }
 0x34f   :  { %v4635_v48 = vpop.f32.mrb[48].mxu1 }
 0x350   :  { %v4636_v49 = vadd.f32 %v5354_v46, %v4635_v48  ;;  %v5982_v50 = vpop.f32.mrb[49].mxu1 }
 0x351   :  { %v4638_v51 = vpop.f32.mrb[50].mxu1 }
 0x352   :  { %v4641_v47 = vmax.f32 %v4636_v49, 0.0  ;;  %v5983_v52 = vpop.f32.mrb[51].mxu1 }
 0x354   :  { %v4642_v53 = vpack.c.bf16 %v4641_v47, %v4641_v47 }
 0x356   :  { %5368 = vmatmul.mubr.msk.bf16.vlgmr.msra.gmra.mrb[52].mxu1 %vm4597_vm1, %v4642_v53 }
 0x429   :  { %v4740_v3 = vpop.f32.mrb[52].mxu1 }
 0x42a   :  { %v4741_v4 = vadd.f32 %v4740_v3, %v4656_v1  ;;  %v4742_v5 = vpop.f32.mrb[53].mxu1 }
 0x42b   :  { %v4743_v6 = vadd.f32 %v4742_v5, %v4660_v2  ;;  %v4744_v7 = vpop.f32.mrb[54].mxu1 }
 0x42c   :  { %6418 = vtanh.f32 %v4741_v4  ;;  %v4745_v8 = vpop.f32.mrb[55].mxu1 }
 0x42d   :  { %6420 = vtanh.f32 %v4743_v6 }
 0x436   :  { %v6419_v9 = vpop.eup %6418 }
 0x437   :  { %v6421_v10 = vpop.eup %6420  ;;  %v4749_v12 = vpack.c.bf16 %v6419_v9, %v6419_v9 }
 0x438   :  { %v4750_v11 = vpack.c.bf16 %v6421_v10, %v6421_v10 }
 0x43a   :  { %4918 = vmatprep.mubr.bf16.mxu0 %v4750_v11 }
 0x43b   :  { %4919 = vmatmul.mubr.bf16.vlgmr.msra.gmra.mrb[52].mxu0 %v4749_v12 }
 0x50e   :  { %v5946_v13 = vpop.f32.mrb[52].mxu0 }
 0x50f   :  { %v5947_v14 = vpop.f32.mrb[53].mxu0 }
 0x510   :  { %v5948_v15 = vadd.f32 %v5947_v14, %v5946_v13  ;;  %v5949_v16 = vpop.f32.mrb[54].mxu0 }
 0x511   :  { %v5950_v17 = vpop.f32.mrb[55].mxu0 }
 0x512   :  { %v4921_v18 = vadd.f32 %v5948_v15, %v5369_v29 }
 0x514   :  { %6422 = vtanh.f32 %v4921_v18 }
 0x51e   :  { %v6423_v20 = vpop.eup %6422 }
 0x51f   :  { %v4928_v22 = vsub.f32 %v4927_v19, %v6423_v20 }
 0x521   :  { %v4936_v34 = vmul.f32 %v5386_v21, %v4928_v22 }
 0x523   :  { %v4938_v24 = vmul.f32 0.5, %v4936_v34 }
 0x525   :  { %v4939_v26 = vmul.f32 %v4938_v24, %v4936_v34 }
 0x527   :  { %v4946_v27 = vsub.f32 %v5387_v25, %v4939_v26 }
 0x529   :  { %v4948_v28 = vsel %vm4947_vm2, %v4946_v27, 0.0 }
 0x52a   :  { %4949 = vadd.xlane.f32.xlu0 %v4948_v28 }
 0x5b7   :  { %v4950_v31 = vpop.xlane.xlu0 %4949 }
 0x5b8   :  { %v4954_v32 = vsel %vm4953_vm3, %v4950_v31, %v6423_v20 }
 0x5b9   :  { %4955 = vst [vmem:[%s7914_s12] sm:$0x3] %v4954_v32 }

</bundles_post_ra>
